<compile_context>
chip_gen: v7x
topology: tpu7x:2x2x1
jax: 0.10.0
libtpu: 0.0.40
codegen_flags: <defaults>
</compile_context>

<pallas_src>
import functools

import jax
import jax.numpy as jnp
from jax import lax
from jax.experimental import pallas as pl
from jax.experimental.pallas import tpu as pltpu


# ----------------------------- Pallas kernel -------------------------------

def _gru_stack_kernel(*refs, n_layers, T, B, H, D):
    """Full GRU stack (all layers, all directions) in one kernel.

    Ref layout (all VMEM):
      refs[0]              x_big   (T*B, D*E)     layer-0 input (copy per dir;
                                                  copy 1 is time-reversed)
      refs[1+4l .. 4+4l]   per layer l:
                           W_in_big (D*I_l, 3*D*H)  input weights (block layout)
                           W_hh_big (D*H,   3*D*H)  block-diagonal hidden weights
                           gx_bias  (1, 3*D*H)      r/z: b_ih+b_hh, n: b_ih
                           b_hn     (1, D*H)        n-gate hidden bias
      refs[1+4L]           out     (T*B, D*H)     last-layer output, time-major
      refs[2+4L]           gx_ref  (T*B, 3*D*H)   scratch: hoisted input proj
      refs[3+4L]           mid_ref (T*B, D*D*H)   scratch: inter-layer output
                                                  (only if n_layers > 1)

    Gate column layout everywhere: [r_d0..r_d(D-1) | z_* | n_*], blocks of H.
    Hidden-state layout: h = [h_d0 | ... | h_d(D-1)], shape (B, D*H).
    """
    x_ref = refs[0]
    layer_refs = [refs[1 + 4 * l: 1 + 4 * (l + 1)] for l in range(n_layers)]
    out_ref = refs[1 + 4 * n_layers]
    gx_ref = refs[2 + 4 * n_layers]
    mid_ref = refs[3 + 4 * n_layers] if n_layers > 1 else None

    DH = D * H

    def run_layer(x_big, wih_ref, whh_ref, gxb_ref, bhn_ref, dst_ref, is_last):
        # Hoisted input projection: ONE matmul covering every timestep and
        # both directions (the reverse direction's time flip is baked into the
        # column copies of x_big), with r/z biases pre-folded in.
        gx_ref[...] = (jnp.dot(x_big, wih_ref[...],
                               preferred_element_type=jnp.float32)
                       + gxb_ref[...])

        whh = whh_ref[...]                                # (D*H, 3*D*H)
        bhn = jnp.broadcast_to(bhn_ref[...], (B, DH))     # hoisted broadcast
        h = jnp.zeros((B, DH), jnp.float32)               # [h_fwd | h_rev]

        # Fully unrolled time loop (T static). The only serial dependence per
        # step is h -> gh -> gates -> h; gx loads and output stores are off
        # that chain and get overlapped by the scheduler.
        for s in range(T):
            gh = jnp.dot(h, whh, preferred_element_type=jnp.float32)  # (B,3DH)
            gx_s = gx_ref[s * B:(s + 1) * B, :]                       # (B,3DH)

            rz = jax.nn.sigmoid(gx_s[:, :2 * DH] + gh[:, :2 * DH])
            r = rz[:, :DH]
            z = rz[:, DH:]
            n = jnp.tanh(gx_s[:, 2 * DH:] + r * (gh[:, 2 * DH:] + bhn))
            h = (1.0 - z) * n + z * h

            # Write back: direction 0 output belongs to time s, direction 1
            # (reverse) output belongs to time T-1-s.
            for d in range(D):
                td = s if d == 0 else T - 1 - s
                hd = h[:, d * H:(d + 1) * H]
                dst_ref[td * B:(td + 1) * B, d * H:(d + 1) * H] = hd
                if (not is_last) and D == 2:
                    # Also store the time-reversed copy consumed by the next
                    # layer's reverse direction (keeps the next layer's gx a
                    # single matmul; no flips anywhere).
                    tr = T - 1 - td
                    dst_ref[tr * B:(tr + 1) * B,
                            DH + d * H:DH + (d + 1) * H] = hd

    cur = x_ref[...]
    for l in range(n_layers):
        is_last = l == n_layers - 1
        dst = out_ref if is_last else mid_ref
        run_layer(cur, *layer_refs[l], dst, is_last)
        if not is_last:
            cur = mid_ref[...]


# --------------------------- Parameter packing ------------------------------

def make_gru_params(key, n_layers, input_size, hidden_size, bidirectional):
    """Deterministic init with torch.nn.GRU shapes (gate row order r, z, n)."""
    k = 1.0 / float(hidden_size) ** 0.5
    n_dirs = 2 if bidirectional else 1
    params = []
    for layer in range(n_layers):
        in_size = input_size if layer == 0 else hidden_size * n_dirs
        layer_params = []
        for _ in range(n_dirs):
            key, k1, k2, k3, k4 = jax.random.split(key, 5)
            w_ih = jax.random.uniform(k1, (3 * hidden_size, in_size),
                                      jnp.float32, -k, k)
            w_hh = jax.random.uniform(k2, (3 * hidden_size, hidden_size),
                                      jnp.float32, -k, k)
            b_ih = jax.random.uniform(k3, (3 * hidden_size,), jnp.float32, -k, k)
            b_hh = jax.random.uniform(k4, (3 * hidden_size,), jnp.float32, -k, k)
            layer_params.append((w_ih, w_hh, b_ih, b_hh))
        params.append(layer_params)
    return params


def pack_gru_params(raw_params, input_size, hidden_size, bidirectional):
    """Pack torch-layout GRU params into the fused-kernel block layout."""
    D = 2 if bidirectional else 1
    H = hidden_size
    packed = []
    for l, layer in enumerate(raw_params):
        I = input_size if l == 0 else D * H
        wih_big = jnp.zeros((D * I, 3 * D * H), jnp.float32)
        whh_big = jnp.zeros((D * H, 3 * D * H), jnp.float32)
        gxb = jnp.zeros((1, 3 * D * H), jnp.float32)
        bhn = jnp.zeros((1, D * H), jnp.float32)
        for d, (w_ih, w_hh, b_ih, b_hh) in enumerate(layer):
            for g in range(3):                          # 0=r, 1=z, 2=n
                c0 = (g * D + d) * H
                wih_big = wih_big.at[d * I:(d + 1) * I, c0:c0 + H].set(
                    w_ih[g * H:(g + 1) * H, :].T)
                whh_big = whh_big.at[d * H:(d + 1) * H, c0:c0 + H].set(
                    w_hh[g * H:(g + 1) * H, :].T)
                b = b_ih[g * H:(g + 1) * H]
                if g < 2:                               # fold b_hh for r, z
                    b = b + b_hh[g * H:(g + 1) * H]
                gxb = gxb.at[0, c0:c0 + H].set(b)
            bhn = bhn.at[0, d * H:(d + 1) * H].set(b_hh[2 * H:3 * H])
        packed.append((wih_big, whh_big, gxb, bhn))
    return packed


# ------------------------------ Encoder wrapper ------------------------------

def gru_original_encoder(inputs, seq_len, packed_params, *, hidden_size,
                         bidirectional):
    """Forward pass of GRUOriginalEncoder (dropout = identity at inference).

    inputs:  (B, S, E) float32;  seq_len unused (nn.GRU without packing).
    returns: (B, S, num_directions * hidden_size)
    """
    del seq_len  # nn.GRU without pack_padded_sequence ignores it
    D = 2 if bidirectional else 1
    H = hidden_size
    n_layers = len(packed_params)
    B, T, E = inputs.shape

    x = jnp.transpose(inputs, (1, 0, 2))                 # (T, B, E) time-major
    x_flat = x.reshape(T * B, E)
    if D == 2:
        # Column copy 1 is the time-reversed sequence: the kernel's reverse
        # direction reads it at the same row index as the forward direction.
        x_big = jnp.concatenate([x_flat, x[::-1].reshape(T * B, E)], axis=-1)
    else:
        x_big = x_flat

    kernel = functools.partial(_gru_stack_kernel, n_layers=n_layers,
                               T=T, B=B, H=H, D=D)
    vmem = pl.BlockSpec(memory_space=pltpu.MemorySpace.VMEM)
    flat_params = [p for layer in packed_params for p in layer]
    scratch = [pltpu.VMEM((T * B, 3 * D * H), jnp.float32)]      # hoisted gx
    if n_layers > 1:
        scratch.append(pltpu.VMEM((T * B, D * D * H), jnp.float32))  # layer io

    # TODO(synk): for realistic T/B/H, tile the time axis with a grid +
    # BlockSpecs (h carried in scratch) and cast MXU inputs to bf16; at these
    # toy shapes everything fits a few vregs so it is unnecessary.
    out = pl.pallas_call(
        kernel,
        out_shape=jax.ShapeDtypeStruct((T * B, D * H), jnp.float32),
        in_specs=[vmem] * (1 + len(flat_params)),
        out_specs=vmem,
        scratch_shapes=scratch,
    )(x_big, *flat_params)

    return out.reshape(T, B, D * H).transpose(1, 0, 2)   # (B, S, D*H)


# ------------------------------ Reference -----------------------------------

def _gru_direction_ref(x_tbe, w_ih, w_hh, b_ih, b_hh):
    H = w_hh.shape[1]

    def step(h, x_t):
        gx = x_t @ w_ih.T + b_ih
        gh = h @ w_hh.T + b_hh
        r = jax.nn.sigmoid(gx[:, :H] + gh[:, :H])
        z = jax.nn.sigmoid(gx[:, H:2 * H] + gh[:, H:2 * H])
        n = jnp.tanh(gx[:, 2 * H:] + r * gh[:, 2 * H:])
        h_new = (1.0 - z) * n + z * h
        return h_new, h_new

    h0 = jnp.zeros((x_tbe.shape[1], H), jnp.float32)
    _, ys = lax.scan(step, h0, x_tbe)
    return ys


def gru_original_encoder_ref(inputs, raw_params, bidirectional):
    x = jnp.transpose(inputs, (1, 0, 2))
    for layer in raw_params:
        outs = [_gru_direction_ref(x, *layer[0])]
        if bidirectional:
            y_rev = _gru_direction_ref(jnp.flip(x, axis=0), *layer[1])
            outs.append(jnp.flip(y_rev, axis=0))
        x = jnp.concatenate(outs, axis=-1)
    return jnp.transpose(x, (1, 0, 2))


# -------------------------------- Main ---------------------------------------

if __name__ == "__main__":
    # Module config (matches GRUOriginalEncoder.__init__)
    n_layers = 2
    text_embedding_size = 16
    encoder_hidden_size = 32
    bidirectional = True
    dropout = 0.0          # identity at inference
    hidden_size = encoder_hidden_size // 2 if bidirectional else encoder_hidden_size

    batch, seq = 2, 8

    key = jax.random.PRNGKey(0)
    key, k_in = jax.random.split(key)
    inputs = jax.random.normal(k_in, (batch, seq, text_embedding_size), jnp.float32)
    seq_len = jnp.full((batch,), seq, jnp.int32)

    raw_params = make_gru_params(key, n_layers, text_embedding_size,
                                 hidden_size, bidirectional)
    packed = pack_gru_params(raw_params, text_embedding_size,
                             hidden_size, bidirectional)

    fwd = jax.jit(functools.partial(gru_original_encoder,
                                    hidden_size=hidden_size,
                                    bidirectional=bidirectional))
    out = jax.block_until_ready(fwd(inputs, seq_len, packed))

    expected_shape = (batch, seq, encoder_hidden_size)
    assert out.shape == expected_shape, (out.shape, expected_shape)

    ref = jax.block_until_ready(
        gru_original_encoder_ref(inputs, raw_params, bidirectional))
    max_err = float(jnp.max(jnp.abs(out - ref)))
    assert jnp.allclose(out, ref, rtol=1e-4, atol=1e-4), max_err

    print("KERNEL_OK")
</pallas_src>

<mosaic_0001>
module attributes {stable_mosaic.version = 11 : i64} {
  func.func @_gru_stack_kernel(%arg0: memref<16x32xf32, #tpu.memory_space<vmem>>, %arg1: memref<32x96xf32, #tpu.memory_space<vmem>>, %arg2: memref<32x96xf32, #tpu.memory_space<vmem>>, %arg3: memref<1x96xf32, #tpu.memory_space<vmem>>, %arg4: memref<1x32xf32, #tpu.memory_space<vmem>>, %arg5: memref<64x96xf32, #tpu.memory_space<vmem>>, %arg6: memref<32x96xf32, #tpu.memory_space<vmem>>, %arg7: memref<1x96xf32, #tpu.memory_space<vmem>>, %arg8: memref<1x32xf32, #tpu.memory_space<vmem>>, %arg9: memref<16x32xf32, #tpu.memory_space<vmem>>, %arg10: memref<16x96xf32, #tpu.memory_space<vmem>>, %arg11: memref<16x64xf32, #tpu.memory_space<vmem>>) attributes {dimension_semantics = [], scalar_prefetch = 0 : i64, scratch_operands = 2 : i64, tpu.core_type = #tpu.core_type<tc>} {
    %c0 = arith.constant 0 : index
    %c0_0 = arith.constant 0 : index
    %0 = vector.load %arg0[%c0, %c0_0] : memref<16x32xf32, #tpu.memory_space<vmem>>, vector<16x32xf32>
    %c0_1 = arith.constant 0 : index
    %c0_2 = arith.constant 0 : index
    %1 = vector.load %arg1[%c0_1, %c0_2] : memref<32x96xf32, #tpu.memory_space<vmem>>, vector<32x96xf32>
    %cst = arith.constant dense<0.000000e+00> : vector<16x96xf32>
    %2 = tpu.matmul %0, %1, %cst {dimension_numbers = #tpu.dot_dimension_numbers<[1], [0], [0], [1], [0, 0, 1, 1], [], []>} : vector<16x32xf32>, vector<32x96xf32>, vector<16x96xf32> -> vector<16x96xf32>
    %c0_3 = arith.constant 0 : index
    %c0_4 = arith.constant 0 : index
    %3 = vector.load %arg3[%c0_3, %c0_4] : memref<1x96xf32, #tpu.memory_space<vmem>>, vector<1x96xf32>
    %4 = vector.broadcast %3 : vector<1x96xf32> to vector<16x96xf32>
    %5 = arith.addf %2, %4 : vector<16x96xf32>
    %c0_5 = arith.constant 0 : index
    %c0_6 = arith.constant 0 : index
    %6 = vector.load %arg10[%c0_5, %c0_6] : memref<16x96xf32, #tpu.memory_space<vmem>>, vector<16x96xf32>
    tpu.vector_store %arg10[%c0_5, %c0_6], %5 {strides = array<i32>} : memref<16x96xf32, #tpu.memory_space<vmem>>, vector<16x96xf32>,
    %c0_7 = arith.constant 0 : index
    %c0_8 = arith.constant 0 : index
    %7 = vector.load %arg2[%c0_7, %c0_8] : memref<32x96xf32, #tpu.memory_space<vmem>>, vector<32x96xf32>
    %c0_9 = arith.constant 0 : index
    %c0_10 = arith.constant 0 : index
    %8 = vector.load %arg4[%c0_9, %c0_10] : memref<1x32xf32, #tpu.memory_space<vmem>>, vector<1x32xf32>
    %9 = vector.shape_cast %8 : vector<1x32xf32> to vector<1x32xf32>
    %10 = vector.broadcast %9 : vector<1x32xf32> to vector<2x32xf32>
    %cst_11 = arith.constant 0.000000e+00 : f32
    %11 = vector.broadcast %cst_11 : f32 to vector<2x32xf32>
    %cst_12 = arith.constant dense<0.000000e+00> : vector<2x96xf32>
    %12 = tpu.matmul %11, %7, %cst_12 {dimension_numbers = #tpu.dot_dimension_numbers<[1], [0], [0], [1], [0, 0, 1, 1], [], []>} : vector<2x32xf32>, vector<32x96xf32>, vector<2x96xf32> -> vector<2x96xf32>
    %c0_13 = arith.constant 0 : index
    %c0_14 = arith.constant 0 : index
    %13 = vector.load %arg10[%c0_13, %c0_14] : memref<16x96xf32, #tpu.memory_space<vmem>>, vector<2x96xf32>
    %14 = vector.extract_strided_slice %13 {offsets = [0, 0], sizes = [2, 64], strides = [1, 1]} : vector<2x96xf32> to vector<2x64xf32>
    %15 = vector.extract_strided_slice %12 {offsets = [0, 0], sizes = [2, 64], strides = [1, 1]} : vector<2x96xf32> to vector<2x64xf32>
    %16 = arith.addf %14, %15 : vector<2x64xf32>
    %17 = arith.negf %16 : vector<2x64xf32>
    %18 = math.exp %17 : vector<2x64xf32>
    %cst_15 = arith.constant 1.000000e+00 : f32
    %19 = vector.broadcast %cst_15 : f32 to vector<2x64xf32>
    %20 = arith.addf %19, %18 : vector<2x64xf32>
    %21 = arith.divf %19, %20 : vector<2x64xf32>
    %22 = vector.extract_strided_slice %21 {offsets = [0, 0], sizes = [2, 32], strides = [1, 1]} : vector<2x64xf32> to vector<2x32xf32>
    %23 = vector.extract_strided_slice %21 {offsets = [0, 32], sizes = [2, 32], strides = [1, 1]} : vector<2x64xf32> to vector<2x32xf32>
    %24 = vector.extract_strided_slice %13 {offsets = [0, 64], sizes = [2, 32], strides = [1, 1]} : vector<2x96xf32> to vector<2x32xf32>
    %25 = vector.extract_strided_slice %12 {offsets = [0, 64], sizes = [2, 32], strides = [1, 1]} : vector<2x96xf32> to vector<2x32xf32>
    %26 = arith.addf %25, %10 : vector<2x32xf32>
    %27 = arith.mulf %22, %26 : vector<2x32xf32>
    %28 = arith.addf %24, %27 : vector<2x32xf32>
    %29 = math.tanh %28 : vector<2x32xf32>
    %cst_16 = arith.constant 1.000000e+00 : f32
    %30 = vector.broadcast %cst_16 : f32 to vector<2x32xf32>
    %31 = arith.subf %30, %23 : vector<2x32xf32>
    %32 = arith.mulf %31, %29 : vector<2x32xf32>
    %33 = arith.mulf %23, %11 : vector<2x32xf32>
    %34 = arith.addf %32, %33 : vector<2x32xf32>
    %35 = vector.extract_strided_slice %34 {offsets = [0, 0], sizes = [2, 16], strides = [1, 1]} : vector<2x32xf32> to vector<2x16xf32>
    %c0_17 = arith.constant 0 : index
    %c0_18 = arith.constant 0 : index
    %36 = vector.load %arg11[%c0_17, %c0_18] : memref<16x64xf32, #tpu.memory_space<vmem>>, vector<2x16xf32>
    tpu.vector_store %arg11[%c0_17, %c0_18], %35 {strides = array<i32>} : memref<16x64xf32, #tpu.memory_space<vmem>>, vector<2x16xf32>,
    %c14 = arith.constant 14 : index
    %c32 = arith.constant 32 : index
    %37 = vector.load %arg11[%c14, %c32] : memref<16x64xf32, #tpu.memory_space<vmem>>, vector<2x16xf32>
    tpu.vector_store %arg11[%c14, %c32], %35 {strides = array<i32>} : memref<16x64xf32, #tpu.memory_space<vmem>>, vector<2x16xf32>,
    %38 = vector.extract_strided_slice %34 {offsets = [0, 16], sizes = [2, 16], strides = [1, 1]} : vector<2x32xf32> to vector<2x16xf32>
    %c14_19 = arith.constant 14 : index
    %c16 = arith.constant 16 : index
    %39 = vector.load %arg11[%c14_19, %c16] : memref<16x64xf32, #tpu.memory_space<vmem>>, vector<2x16xf32>
    tpu.vector_store %arg11[%c14_19, %c16], %38 {strides = array<i32>} : memref<16x64xf32, #tpu.memory_space<vmem>>, vector<2x16xf32>,
    %c0_20 = arith.constant 0 : index
    %c48 = arith.constant 48 : index
    %40 = vector.load %arg11[%c0_20, %c48] : memref<16x64xf32, #tpu.memory_space<vmem>>, vector<2x16xf32>
    tpu.vector_store %arg11[%c0_20, %c48], %38 {strides = array<i32>} : memref<16x64xf32, #tpu.memory_space<vmem>>, vector<2x16xf32>,
    %cst_21 = arith.constant dense<0.000000e+00> : vector<2x96xf32>
    %41 = tpu.matmul %34, %7, %cst_21 {dimension_numbers = #tpu.dot_dimension_numbers<[1], [0], [0], [1], [0, 0, 1, 1], [], []>} : vector<2x32xf32>, vector<32x96xf32>, vector<2x96xf32> -> vector<2x96xf32>
    %c2 = arith.constant 2 : index
    %c0_22 = arith.constant 0 : index
    %42 = vector.load %arg10[%c2, %c0_22] : memref<16x96xf32, #tpu.memory_space<vmem>>, vector<2x96xf32>
    %43 = vector.extract_strided_slice %42 {offsets = [0, 0], sizes = [2, 64], strides = [1, 1]} : vector<2x96xf32> to vector<2x64xf32>
    %44 = vector.extract_strided_slice %41 {offsets = [0, 0], sizes = [2, 64], strides = [1, 1]} : vector<2x96xf32> to vector<2x64xf32>
    %45 = arith.addf %43, %44 : vector<2x64xf32>
    %46 = arith.negf %45 : vector<2x64xf32>
    %47 = math.exp %46 : vector<2x64xf32>
    %cst_23 = arith.constant 1.000000e+00 : f32
    %48 = vector.broadcast %cst_23 : f32 to vector<2x64xf32>
    %49 = arith.addf %48, %47 : vector<2x64xf32>
    %50 = arith.divf %48, %49 : vector<2x64xf32>
    %51 = vector.extract_strided_slice %50 {offsets = [0, 0], sizes = [2, 32], strides = [1, 1]} : vector<2x64xf32> to vector<2x32xf32>
    %52 = vector.extract_strided_slice %50 {offsets = [0, 32], sizes = [2, 32], strides = [1, 1]} : vector<2x64xf32> to vector<2x32xf32>
    %53 = vector.extract_strided_slice %42 {offsets = [0, 64], sizes = [2, 32], strides = [1, 1]} : vector<2x96xf32> to vector<2x32xf32>
    %54 = vector.extract_strided_slice %41 {offsets = [0, 64], sizes = [2, 32], strides = [1, 1]} : vector<2x96xf32> to vector<2x32xf32>
    %55 = arith.addf %54, %10 : vector<2x32xf32>
    %56 = arith.mulf %51, %55 : vector<2x32xf32>
    %57 = arith.addf %53, %56 : vector<2x32xf32>
    %58 = math.tanh %57 : vector<2x32xf32>
    %cst_24 = arith.constant 1.000000e+00 : f32
    %59 = vector.broadcast %cst_24 : f32 to vector<2x32xf32>
    %60 = arith.subf %59, %52 : vector<2x32xf32>
    %61 = arith.mulf %60, %58 : vector<2x32xf32>
    %62 = arith.mulf %52, %34 : vector<2x32xf32>
    %63 = arith.addf %61, %62 : vector<2x32xf32>
    %64 = vector.extract_strided_slice %63 {offsets = [0, 0], sizes = [2, 16], strides = [1, 1]} : vector<2x32xf32> to vector<2x16xf32>
    %c2_25 = arith.constant 2 : index
    %c0_26 = arith.constant 0 : index
    %65 = vector.load %arg11[%c2_25, %c0_26] : memref<16x64xf32, #tpu.memory_space<vmem>>, vector<2x16xf32>
    tpu.vector_store %arg11[%c2_25, %c0_26], %64 {strides = array<i32>} : memref<16x64xf32, #tpu.memory_space<vmem>>, vector<2x16xf32>,
    %c12 = arith.constant 12 : index
    %c32_27 = arith.constant 32 : index
    %66 = vector.load %arg11[%c12, %c32_27] : memref<16x64xf32, #tpu.memory_space<vmem>>, vector<2x16xf32>
    tpu.vector_store %arg11[%c12, %c32_27], %64 {strides = array<i32>} : memref<16x64xf32, #tpu.memory_space<vmem>>, vector<2x16xf32>,
    %67 = vector.extract_strided_slice %63 {offsets = [0, 16], sizes = [2, 16], strides = [1, 1]} : vector<2x32xf32> to vector<2x16xf32>
    %c12_28 = arith.constant 12 : index
    %c16_29 = arith.constant 16 : index
    %68 = vector.load %arg11[%c12_28, %c16_29] : memref<16x64xf32, #tpu.memory_space<vmem>>, vector<2x16xf32>
    tpu.vector_store %arg11[%c12_28, %c16_29], %67 {strides = array<i32>} : memref<16x64xf32, #tpu.memory_space<vmem>>, vector<2x16xf32>,
    %c2_30 = arith.constant 2 : index
    %c48_31 = arith.constant 48 : index
    %69 = vector.load %arg11[%c2_30, %c48_31] : memref<16x64xf32, #tpu.memory_space<vmem>>, vector<2x16xf32>
    tpu.vector_store %arg11[%c2_30, %c48_31], %67 {strides = array<i32>} : memref<16x64xf32, #tpu.memory_space<vmem>>, vector<2x16xf32>,
    %cst_32 = arith.constant dense<0.000000e+00> : vector<2x96xf32>
    %70 = tpu.matmul %63, %7, %cst_32 {dimension_numbers = #tpu.dot_dimension_numbers<[1], [0], [0], [1], [0, 0, 1, 1], [], []>} : vector<2x32xf32>, vector<32x96xf32>, vector<2x96xf32> -> vector<2x96xf32>
    %c4 = arith.constant 4 : index
    %c0_33 = arith.constant 0 : index
    %71 = vector.load %arg10[%c4, %c0_33] : memref<16x96xf32, #tpu.memory_space<vmem>>, vector<2x96xf32>
    %72 = vector.extract_strided_slice %71 {offsets = [0, 0], sizes = [2, 64], strides = [1, 1]} : vector<2x96xf32> to vector<2x64xf32>
    %73 = vector.extract_strided_slice %70 {offsets = [0, 0], sizes = [2, 64], strides = [1, 1]} : vector<2x96xf32> to vector<2x64xf32>
    %74 = arith.addf %72, %73 : vector<2x64xf32>
    %75 = arith.negf %74 : vector<2x64xf32>
    %76 = math.exp %75 : vector<2x64xf32>
    %cst_34 = arith.constant 1.000000e+00 : f32
    %77 = vector.broadcast %cst_34 : f32 to vector<2x64xf32>
    %78 = arith.addf %77, %76 : vector<2x64xf32>
    %79 = arith.divf %77, %78 : vector<2x64xf32>
    %80 = vector.extract_strided_slice %79 {offsets = [0, 0], sizes = [2, 32], strides = [1, 1]} : vector<2x64xf32> to vector<2x32xf32>
    %81 = vector.extract_strided_slice %79 {offsets = [0, 32], sizes = [2, 32], strides = [1, 1]} : vector<2x64xf32> to vector<2x32xf32>
    %82 = vector.extract_strided_slice %71 {offsets = [0, 64], sizes = [2, 32], strides = [1, 1]} : vector<2x96xf32> to vector<2x32xf32>
    %83 = vector.extract_strided_slice %70 {offsets = [0, 64], sizes = [2, 32], strides = [1, 1]} : vector<2x96xf32> to vector<2x32xf32>
    %84 = arith.addf %83, %10 : vector<2x32xf32>
    %85 = arith.mulf %80, %84 : vector<2x32xf32>
    %86 = arith.addf %82, %85 : vector<2x32xf32>
    %87 = math.tanh %86 : vector<2x32xf32>
    %cst_35 = arith.constant 1.000000e+00 : f32
    %88 = vector.broadcast %cst_35 : f32 to vector<2x32xf32>
    %89 = arith.subf %88, %81 : vector<2x32xf32>
    %90 = arith.mulf %89, %87 : vector<2x32xf32>
    %91 = arith.mulf %81, %63 : vector<2x32xf32>
    %92 = arith.addf %90, %91 : vector<2x32xf32>
    %93 = vector.extract_strided_slice %92 {offsets = [0, 0], sizes = [2, 16], strides = [1, 1]} : vector<2x32xf32> to vector<2x16xf32>
    %c4_36 = arith.constant 4 : index
    %c0_37 = arith.constant 0 : index
    %94 = vector.load %arg11[%c4_36, %c0_37] : memref<16x64xf32, #tpu.memory_space<vmem>>, vector<2x16xf32>
    tpu.vector_store %arg11[%c4_36, %c0_37], %93 {strides = array<i32>} : memref<16x64xf32, #tpu.memory_space<vmem>>, vector<2x16xf32>,
    %c10 = arith.constant 10 : index
    %c32_38 = arith.constant 32 : index
    %95 = vector.load %arg11[%c10, %c32_38] : memref<16x64xf32, #tpu.memory_space<vmem>>, vector<2x16xf32>
    tpu.vector_store %arg11[%c10, %c32_38], %93 {strides = array<i32>} : memref<16x64xf32, #tpu.memory_space<vmem>>, vector<2x16xf32>,
    %96 = vector.extract_strided_slice %92 {offsets = [0, 16], sizes = [2, 16], strides = [1, 1]} : vector<2x32xf32> to vector<2x16xf32>
    %c10_39 = arith.constant 10 : index
    %c16_40 = arith.constant 16 : index
    %97 = vector.load %arg11[%c10_39, %c16_40] : memref<16x64xf32, #tpu.memory_space<vmem>>, vector<2x16xf32>
    tpu.vector_store %arg11[%c10_39, %c16_40], %96 {strides = array<i32>} : memref<16x64xf32, #tpu.memory_space<vmem>>, vector<2x16xf32>,
    %c4_41 = arith.constant 4 : index
    %c48_42 = arith.constant 48 : index
    %98 = vector.load %arg11[%c4_41, %c48_42] : memref<16x64xf32, #tpu.memory_space<vmem>>, vector<2x16xf32>
    tpu.vector_store %arg11[%c4_41, %c48_42], %96 {strides = array<i32>} : memref<16x64xf32, #tpu.memory_space<vmem>>, vector<2x16xf32>,
    %cst_43 = arith.constant dense<0.000000e+00> : vector<2x96xf32>
    %99 = tpu.matmul %92, %7, %cst_43 {dimension_numbers = #tpu.dot_dimension_numbers<[1], [0], [0], [1], [0, 0, 1, 1], [], []>} : vector<2x32xf32>, vector<32x96xf32>, vector<2x96xf32> -> vector<2x96xf32>
    %c6 = arith.constant 6 : index
    %c0_44 = arith.constant 0 : index
    %100 = vector.load %arg10[%c6, %c0_44] : memref<16x96xf32, #tpu.memory_space<vmem>>, vector<2x96xf32>
    %101 = vector.extract_strided_slice %100 {offsets = [0, 0], sizes = [2, 64], strides = [1, 1]} : vector<2x96xf32> to vector<2x64xf32>
    %102 = vector.extract_strided_slice %99 {offsets = [0, 0], sizes = [2, 64], strides = [1, 1]} : vector<2x96xf32> to vector<2x64xf32>
    %103 = arith.addf %101, %102 : vector<2x64xf32>
    %104 = arith.negf %103 : vector<2x64xf32>
    %105 = math.exp %104 : vector<2x64xf32>
    %cst_45 = arith.constant 1.000000e+00 : f32
    %106 = vector.broadcast %cst_45 : f32 to vector<2x64xf32>
    %107 = arith.addf %106, %105 : vector<2x64xf32>
    %108 = arith.divf %106, %107 : vector<2x64xf32>
    %109 = vector.extract_strided_slice %108 {offsets = [0, 0], sizes = [2, 32], strides = [1, 1]} : vector<2x64xf32> to vector<2x32xf32>
    %110 = vector.extract_strided_slice %108 {offsets = [0, 32], sizes = [2, 32], strides = [1, 1]} : vector<2x64xf32> to vector<2x32xf32>
    %111 = vector.extract_strided_slice %100 {offsets = [0, 64], sizes = [2, 32], strides = [1, 1]} : vector<2x96xf32> to vector<2x32xf32>
    %112 = vector.extract_strided_slice %99 {offsets = [0, 64], sizes = [2, 32], strides = [1, 1]} : vector<2x96xf32> to vector<2x32xf32>
    %113 = arith.addf %112, %10 : vector<2x32xf32>
    %114 = arith.mulf %109, %113 : vector<2x32xf32>
    %115 = arith.addf %111, %114 : vector<2x32xf32>
    %116 = math.tanh %115 : vector<2x32xf32>
    %cst_46 = arith.constant 1.000000e+00 : f32
    %117 = vector.broadcast %cst_46 : f32 to vector<2x32xf32>
    %118 = arith.subf %117, %110 : vector<2x32xf32>
    %119 = arith.mulf %118, %116 : vector<2x32xf32>
    %120 = arith.mulf %110, %92 : vector<2x32xf32>
    %121 = arith.addf %119, %120 : vector<2x32xf32>
    %122 = vector.extract_strided_slice %121 {offsets = [0, 0], sizes = [2, 16], strides = [1, 1]} : vector<2x32xf32> to vector<2x16xf32>
    %c6_47 = arith.constant 6 : index
    %c0_48 = arith.constant 0 : index
    %123 = vector.load %arg11[%c6_47, %c0_48] : memref<16x64xf32, #tpu.memory_space<vmem>>, vector<2x16xf32>
    tpu.vector_store %arg11[%c6_47, %c0_48], %122 {strides = array<i32>} : memref<16x64xf32, #tpu.memory_space<vmem>>, vector<2x16xf32>,
    %c8 = arith.constant 8 : index
    %c32_49 = arith.constant 32 : index
    %124 = vector.load %arg11[%c8, %c32_49] : memref<16x64xf32, #tpu.memory_space<vmem>>, vector<2x16xf32>
    tpu.vector_store %arg11[%c8, %c32_49], %122 {strides = array<i32>} : memref<16x64xf32, #tpu.memory_space<vmem>>, vector<2x16xf32>,
    %125 = vector.extract_strided_slice %121 {offsets = [0, 16], sizes = [2, 16], strides = [1, 1]} : vector<2x32xf32> to vector<2x16xf32>
    %c8_50 = arith.constant 8 : index
    %c16_51 = arith.constant 16 : index
    %126 = vector.load %arg11[%c8_50, %c16_51] : memref<16x64xf32, #tpu.memory_space<vmem>>, vector<2x16xf32>
    tpu.vector_store %arg11[%c8_50, %c16_51], %125 {strides = array<i32>} : memref<16x64xf32, #tpu.memory_space<vmem>>, vector<2x16xf32>,
    %c6_52 = arith.constant 6 : index
    %c48_53 = arith.constant 48 : index
    %127 = vector.load %arg11[%c6_52, %c48_53] : memref<16x64xf32, #tpu.memory_space<vmem>>, vector<2x16xf32>
    tpu.vector_store %arg11[%c6_52, %c48_53], %125 {strides = array<i32>} : memref<16x64xf32, #tpu.memory_space<vmem>>, vector<2x16xf32>,
    %cst_54 = arith.constant dense<0.000000e+00> : vector<2x96xf32>
    %128 = tpu.matmul %121, %7, %cst_54 {dimension_numbers = #tpu.dot_dimension_numbers<[1], [0], [0], [1], [0, 0, 1, 1], [], []>} : vector<2x32xf32>, vector<32x96xf32>, vector<2x96xf32> -> vector<2x96xf32>
    %c8_55 = arith.constant 8 : index
    %c0_56 = arith.constant 0 : index
    %129 = vector.load %arg10[%c8_55, %c0_56] : memref<16x96xf32, #tpu.memory_space<vmem>>, vector<2x96xf32>
    %130 = vector.extract_strided_slice %129 {offsets = [0, 0], sizes = [2, 64], strides = [1, 1]} : vector<2x96xf32> to vector<2x64xf32>
    %131 = vector.extract_strided_slice %128 {offsets = [0, 0], sizes = [2, 64], strides = [1, 1]} : vector<2x96xf32> to vector<2x64xf32>
    %132 = arith.addf %130, %131 : vector<2x64xf32>
    %133 = arith.negf %132 : vector<2x64xf32>
    %134 = math.exp %133 : vector<2x64xf32>
    %cst_57 = arith.constant 1.000000e+00 : f32
    %135 = vector.broadcast %cst_57 : f32 to vector<2x64xf32>
    %136 = arith.addf %135, %134 : vector<2x64xf32>
    %137 = arith.divf %135, %136 : vector<2x64xf32>
    %138 = vector.extract_strided_slice %137 {offsets = [0, 0], sizes = [2, 32], strides = [1, 1]} : vector<2x64xf32> to vector<2x32xf32>
    %139 = vector.extract_strided_slice %137 {offsets = [0, 32], sizes = [2, 32], strides = [1, 1]} : vector<2x64xf32> to vector<2x32xf32>
    %140 = vector.extract_strided_slice %129 {offsets = [0, 64], sizes = [2, 32], strides = [1, 1]} : vector<2x96xf32> to vector<2x32xf32>
    %141 = vector.extract_strided_slice %128 {offsets = [0, 64], sizes = [2, 32], strides = [1, 1]} : vector<2x96xf32> to vector<2x32xf32>
    %142 = arith.addf %141, %10 : vector<2x32xf32>
    %143 = arith.mulf %138, %142 : vector<2x32xf32>
    %144 = arith.addf %140, %143 : vector<2x32xf32>
    %145 = math.tanh %144 : vector<2x32xf32>
    %cst_58 = arith.constant 1.000000e+00 : f32
    %146 = vector.broadcast %cst_58 : f32 to vector<2x32xf32>
    %147 = arith.subf %146, %139 : vector<2x32xf32>
    %148 = arith.mulf %147, %145 : vector<2x32xf32>
    %149 = arith.mulf %139, %121 : vector<2x32xf32>
    %150 = arith.addf %148, %149 : vector<2x32xf32>
    %151 = vector.extract_strided_slice %150 {offsets = [0, 0], sizes = [2, 16], strides = [1, 1]} : vector<2x32xf32> to vector<2x16xf32>
    %c8_59 = arith.constant 8 : index
    %c0_60 = arith.constant 0 : index
    %152 = vector.load %arg11[%c8_59, %c0_60] : memref<16x64xf32, #tpu.memory_space<vmem>>, vector<2x16xf32>
    tpu.vector_store %arg11[%c8_59, %c0_60], %151 {strides = array<i32>} : memref<16x64xf32, #tpu.memory_space<vmem>>, vector<2x16xf32>,
    %c6_61 = arith.constant 6 : index
    %c32_62 = arith.constant 32 : index
    %153 = vector.load %arg11[%c6_61, %c32_62] : memref<16x64xf32, #tpu.memory_space<vmem>>, vector<2x16xf32>
    tpu.vector_store %arg11[%c6_61, %c32_62], %151 {strides = array<i32>} : memref<16x64xf32, #tpu.memory_space<vmem>>, vector<2x16xf32>,
    %154 = vector.extract_strided_slice %150 {offsets = [0, 16], sizes = [2, 16], strides = [1, 1]} : vector<2x32xf32> to vector<2x16xf32>
    %c6_63 = arith.constant 6 : index
    %c16_64 = arith.constant 16 : index
    %155 = vector.load %arg11[%c6_63, %c16_64] : memref<16x64xf32, #tpu.memory_space<vmem>>, vector<2x16xf32>
    tpu.vector_store %arg11[%c6_63, %c16_64], %154 {strides = array<i32>} : memref<16x64xf32, #tpu.memory_space<vmem>>, vector<2x16xf32>,
    %c8_65 = arith.constant 8 : index
    %c48_66 = arith.constant 48 : index
    %156 = vector.load %arg11[%c8_65, %c48_66] : memref<16x64xf32, #tpu.memory_space<vmem>>, vector<2x16xf32>
    tpu.vector_store %arg11[%c8_65, %c48_66], %154 {strides = array<i32>} : memref<16x64xf32, #tpu.memory_space<vmem>>, vector<2x16xf32>,
    %cst_67 = arith.constant dense<0.000000e+00> : vector<2x96xf32>
    %157 = tpu.matmul %150, %7, %cst_67 {dimension_numbers = #tpu.dot_dimension_numbers<[1], [0], [0], [1], [0, 0, 1, 1], [], []>} : vector<2x32xf32>, vector<32x96xf32>, vector<2x96xf32> -> vector<2x96xf32>
    %c10_68 = arith.constant 10 : index
    %c0_69 = arith.constant 0 : index
    %158 = vector.load %arg10[%c10_68, %c0_69] : memref<16x96xf32, #tpu.memory_space<vmem>>, vector<2x96xf32>
    %159 = vector.extract_strided_slice %158 {offsets = [0, 0], sizes = [2, 64], strides = [1, 1]} : vector<2x96xf32> to vector<2x64xf32>
    %160 = vector.extract_strided_slice %157 {offsets = [0, 0], sizes = [2, 64], strides = [1, 1]} : vector<2x96xf32> to vector<2x64xf32>
    %161 = arith.addf %159, %160 : vector<2x64xf32>
    %162 = arith.negf %161 : vector<2x64xf32>
    %163 = math.exp %162 : vector<2x64xf32>
    %cst_70 = arith.constant 1.000000e+00 : f32
    %164 = vector.broadcast %cst_70 : f32 to vector<2x64xf32>
    %165 = arith.addf %164, %163 : vector<2x64xf32>
    %166 = arith.divf %164, %165 : vector<2x64xf32>
    %167 = vector.extract_strided_slice %166 {offsets = [0, 0], sizes = [2, 32], strides = [1, 1]} : vector<2x64xf32> to vector<2x32xf32>
    %168 = vector.extract_strided_slice %166 {offsets = [0, 32], sizes = [2, 32], strides = [1, 1]} : vector<2x64xf32> to vector<2x32xf32>
    %169 = vector.extract_strided_slice %158 {offsets = [0, 64], sizes = [2, 32], strides = [1, 1]} : vector<2x96xf32> to vector<2x32xf32>
    %170 = vector.extract_strided_slice %157 {offsets = [0, 64], sizes = [2, 32], strides = [1, 1]} : vector<2x96xf32> to vector<2x32xf32>
    %171 = arith.addf %170, %10 : vector<2x32xf32>
    %172 = arith.mulf %167, %171 : vector<2x32xf32>
    %173 = arith.addf %169, %172 : vector<2x32xf32>
    %174 = math.tanh %173 : vector<2x32xf32>
    %cst_71 = arith.constant 1.000000e+00 : f32
    %175 = vector.broadcast %cst_71 : f32 to vector<2x32xf32>
    %176 = arith.subf %175, %168 : vector<2x32xf32>
    %177 = arith.mulf %176, %174 : vector<2x32xf32>
    %178 = arith.mulf %168, %150 : vector<2x32xf32>
    %179 = arith.addf %177, %178 : vector<2x32xf32>
    %180 = vector.extract_strided_slice %179 {offsets = [0, 0], sizes = [2, 16], strides = [1, 1]} : vector<2x32xf32> to vector<2x16xf32>
    %c10_72 = arith.constant 10 : index
    %c0_73 = arith.constant 0 : index
    %181 = vector.load %arg11[%c10_72, %c0_73] : memref<16x64xf32, #tpu.memory_space<vmem>>, vector<2x16xf32>
    tpu.vector_store %arg11[%c10_72, %c0_73], %180 {strides = array<i32>} : memref<16x64xf32, #tpu.memory_space<vmem>>, vector<2x16xf32>,
    %c4_74 = arith.constant 4 : index
    %c32_75 = arith.constant 32 : index
    %182 = vector.load %arg11[%c4_74, %c32_75] : memref<16x64xf32, #tpu.memory_space<vmem>>, vector<2x16xf32>
    tpu.vector_store %arg11[%c4_74, %c32_75], %180 {strides = array<i32>} : memref<16x64xf32, #tpu.memory_space<vmem>>, vector<2x16xf32>,
    %183 = vector.extract_strided_slice %179 {offsets = [0, 16], sizes = [2, 16], strides = [1, 1]} : vector<2x32xf32> to vector<2x16xf32>
    %c4_76 = arith.constant 4 : index
    %c16_77 = arith.constant 16 : index
    %184 = vector.load %arg11[%c4_76, %c16_77] : memref<16x64xf32, #tpu.memory_space<vmem>>, vector<2x16xf32>
    tpu.vector_store %arg11[%c4_76, %c16_77], %183 {strides = array<i32>} : memref<16x64xf32, #tpu.memory_space<vmem>>, vector<2x16xf32>,
    %c10_78 = arith.constant 10 : index
    %c48_79 = arith.constant 48 : index
    %185 = vector.load %arg11[%c10_78, %c48_79] : memref<16x64xf32, #tpu.memory_space<vmem>>, vector<2x16xf32>
    tpu.vector_store %arg11[%c10_78, %c48_79], %183 {strides = array<i32>} : memref<16x64xf32, #tpu.memory_space<vmem>>, vector<2x16xf32>,
    %cst_80 = arith.constant dense<0.000000e+00> : vector<2x96xf32>
    %186 = tpu.matmul %179, %7, %cst_80 {dimension_numbers = #tpu.dot_dimension_numbers<[1], [0], [0], [1], [0, 0, 1, 1], [], []>} : vector<2x32xf32>, vector<32x96xf32>, vector<2x96xf32> -> vector<2x96xf32>
    %c12_81 = arith.constant 12 : index
    %c0_82 = arith.constant 0 : index
    %187 = vector.load %arg10[%c12_81, %c0_82] : memref<16x96xf32, #tpu.memory_space<vmem>>, vector<2x96xf32>
    %188 = vector.extract_strided_slice %187 {offsets = [0, 0], sizes = [2, 64], strides = [1, 1]} : vector<2x96xf32> to vector<2x64xf32>
    %189 = vector.extract_strided_slice %186 {offsets = [0, 0], sizes = [2, 64], strides = [1, 1]} : vector<2x96xf32> to vector<2x64xf32>
    %190 = arith.addf %188, %189 : vector<2x64xf32>
    %191 = arith.negf %190 : vector<2x64xf32>
    %192 = math.exp %191 : vector<2x64xf32>
    %cst_83 = arith.constant 1.000000e+00 : f32
    %193 = vector.broadcast %cst_83 : f32 to vector<2x64xf32>
    %194 = arith.addf %193, %192 : vector<2x64xf32>
    %195 = arith.divf %193, %194 : vector<2x64xf32>
    %196 = vector.extract_strided_slice %195 {offsets = [0, 0], sizes = [2, 32], strides = [1, 1]} : vector<2x64xf32> to vector<2x32xf32>
    %197 = vector.extract_strided_slice %195 {offsets = [0, 32], sizes = [2, 32], strides = [1, 1]} : vector<2x64xf32> to vector<2x32xf32>
    %198 = vector.extract_strided_slice %187 {offsets = [0, 64], sizes = [2, 32], strides = [1, 1]} : vector<2x96xf32> to vector<2x32xf32>
    %199 = vector.extract_strided_slice %186 {offsets = [0, 64], sizes = [2, 32], strides = [1, 1]} : vector<2x96xf32> to vector<2x32xf32>
    %200 = arith.addf %199, %10 : vector<2x32xf32>
    %201 = arith.mulf %196, %200 : vector<2x32xf32>
    %202 = arith.addf %198, %201 : vector<2x32xf32>
    %203 = math.tanh %202 : vector<2x32xf32>
    %cst_84 = arith.constant 1.000000e+00 : f32
    %204 = vector.broadcast %cst_84 : f32 to vector<2x32xf32>
    %205 = arith.subf %204, %197 : vector<2x32xf32>
    %206 = arith.mulf %205, %203 : vector<2x32xf32>
    %207 = arith.mulf %197, %179 : vector<2x32xf32>
    %208 = arith.addf %206, %207 : vector<2x32xf32>
    %209 = vector.extract_strided_slice %208 {offsets = [0, 0], sizes = [2, 16], strides = [1, 1]} : vector<2x32xf32> to vector<2x16xf32>
    %c12_85 = arith.constant 12 : index
    %c0_86 = arith.constant 0 : index
    %210 = vector.load %arg11[%c12_85, %c0_86] : memref<16x64xf32, #tpu.memory_space<vmem>>, vector<2x16xf32>
    tpu.vector_store %arg11[%c12_85, %c0_86], %209 {strides = array<i32>} : memref<16x64xf32, #tpu.memory_space<vmem>>, vector<2x16xf32>,
    %c2_87 = arith.constant 2 : index
    %c32_88 = arith.constant 32 : index
    %211 = vector.load %arg11[%c2_87, %c32_88] : memref<16x64xf32, #tpu.memory_space<vmem>>, vector<2x16xf32>
    tpu.vector_store %arg11[%c2_87, %c32_88], %209 {strides = array<i32>} : memref<16x64xf32, #tpu.memory_space<vmem>>, vector<2x16xf32>,
    %212 = vector.extract_strided_slice %208 {offsets = [0, 16], sizes = [2, 16], strides = [1, 1]} : vector<2x32xf32> to vector<2x16xf32>
    %c2_89 = arith.constant 2 : index
    %c16_90 = arith.constant 16 : index
    %213 = vector.load %arg11[%c2_89, %c16_90] : memref<16x64xf32, #tpu.memory_space<vmem>>, vector<2x16xf32>
    tpu.vector_store %arg11[%c2_89, %c16_90], %212 {strides = array<i32>} : memref<16x64xf32, #tpu.memory_space<vmem>>, vector<2x16xf32>,
    %c12_91 = arith.constant 12 : index
    %c48_92 = arith.constant 48 : index
    %214 = vector.load %arg11[%c12_91, %c48_92] : memref<16x64xf32, #tpu.memory_space<vmem>>, vector<2x16xf32>
    tpu.vector_store %arg11[%c12_91, %c48_92], %212 {strides = array<i32>} : memref<16x64xf32, #tpu.memory_space<vmem>>, vector<2x16xf32>,
    %cst_93 = arith.constant dense<0.000000e+00> : vector<2x96xf32>
    %215 = tpu.matmul %208, %7, %cst_93 {dimension_numbers = #tpu.dot_dimension_numbers<[1], [0], [0], [1], [0, 0, 1, 1], [], []>} : vector<2x32xf32>, vector<32x96xf32>, vector<2x96xf32> -> vector<2x96xf32>
    %c14_94 = arith.constant 14 : index
    %c0_95 = arith.constant 0 : index
    %216 = vector.load %arg10[%c14_94, %c0_95] : memref<16x96xf32, #tpu.memory_space<vmem>>, vector<2x96xf32>
    %217 = vector.extract_strided_slice %216 {offsets = [0, 0], sizes = [2, 64], strides = [1, 1]} : vector<2x96xf32> to vector<2x64xf32>
    %218 = vector.extract_strided_slice %215 {offsets = [0, 0], sizes = [2, 64], strides = [1, 1]} : vector<2x96xf32> to vector<2x64xf32>
    %219 = arith.addf %217, %218 : vector<2x64xf32>
    %220 = arith.negf %219 : vector<2x64xf32>
    %221 = math.exp %220 : vector<2x64xf32>
    %cst_96 = arith.constant 1.000000e+00 : f32
    %222 = vector.broadcast %cst_96 : f32 to vector<2x64xf32>
    %223 = arith.addf %222, %221 : vector<2x64xf32>
    %224 = arith.divf %222, %223 : vector<2x64xf32>
    %225 = vector.extract_strided_slice %224 {offsets = [0, 0], sizes = [2, 32], strides = [1, 1]} : vector<2x64xf32> to vector<2x32xf32>
    %226 = vector.extract_strided_slice %224 {offsets = [0, 32], sizes = [2, 32], strides = [1, 1]} : vector<2x64xf32> to vector<2x32xf32>
    %227 = vector.extract_strided_slice %216 {offsets = [0, 64], sizes = [2, 32], strides = [1, 1]} : vector<2x96xf32> to vector<2x32xf32>
    %228 = vector.extract_strided_slice %215 {offsets = [0, 64], sizes = [2, 32], strides = [1, 1]} : vector<2x96xf32> to vector<2x32xf32>
    %229 = arith.addf %228, %10 : vector<2x32xf32>
    %230 = arith.mulf %225, %229 : vector<2x32xf32>
    %231 = arith.addf %227, %230 : vector<2x32xf32>
    %232 = math.tanh %231 : vector<2x32xf32>
    %cst_97 = arith.constant 1.000000e+00 : f32
    %233 = vector.broadcast %cst_97 : f32 to vector<2x32xf32>
    %234 = arith.subf %233, %226 : vector<2x32xf32>
    %235 = arith.mulf %234, %232 : vector<2x32xf32>
    %236 = arith.mulf %226, %208 : vector<2x32xf32>
    %237 = arith.addf %235, %236 : vector<2x32xf32>
    %238 = vector.extract_strided_slice %237 {offsets = [0, 0], sizes = [2, 16], strides = [1, 1]} : vector<2x32xf32> to vector<2x16xf32>
    %c14_98 = arith.constant 14 : index
    %c0_99 = arith.constant 0 : index
    %239 = vector.load %arg11[%c14_98, %c0_99] : memref<16x64xf32, #tpu.memory_space<vmem>>, vector<2x16xf32>
    tpu.vector_store %arg11[%c14_98, %c0_99], %238 {strides = array<i32>} : memref<16x64xf32, #tpu.memory_space<vmem>>, vector<2x16xf32>,
    %c0_100 = arith.constant 0 : index
    %c32_101 = arith.constant 32 : index
    %240 = vector.load %arg11[%c0_100, %c32_101] : memref<16x64xf32, #tpu.memory_space<vmem>>, vector<2x16xf32>
    tpu.vector_store %arg11[%c0_100, %c32_101], %238 {strides = array<i32>} : memref<16x64xf32, #tpu.memory_space<vmem>>, vector<2x16xf32>,
    %241 = vector.extract_strided_slice %237 {offsets = [0, 16], sizes = [2, 16], strides = [1, 1]} : vector<2x32xf32> to vector<2x16xf32>
    %c0_102 = arith.constant 0 : index
    %c16_103 = arith.constant 16 : index
    %242 = vector.load %arg11[%c0_102, %c16_103] : memref<16x64xf32, #tpu.memory_space<vmem>>, vector<2x16xf32>
    tpu.vector_store %arg11[%c0_102, %c16_103], %241 {strides = array<i32>} : memref<16x64xf32, #tpu.memory_space<vmem>>, vector<2x16xf32>,
    %c14_104 = arith.constant 14 : index
    %c48_105 = arith.constant 48 : index
    %243 = vector.load %arg11[%c14_104, %c48_105] : memref<16x64xf32, #tpu.memory_space<vmem>>, vector<2x16xf32>
    tpu.vector_store %arg11[%c14_104, %c48_105], %241 {strides = array<i32>} : memref<16x64xf32, #tpu.memory_space<vmem>>, vector<2x16xf32>,
    %c0_106 = arith.constant 0 : index
    %c0_107 = arith.constant 0 : index
    %244 = vector.load %arg11[%c0_106, %c0_107] : memref<16x64xf32, #tpu.memory_space<vmem>>, vector<16x64xf32>
    %c0_108 = arith.constant 0 : index
    %c0_109 = arith.constant 0 : index
    %245 = vector.load %arg5[%c0_108, %c0_109] : memref<64x96xf32, #tpu.memory_space<vmem>>, vector<64x96xf32>
    %cst_110 = arith.constant dense<0.000000e+00> : vector<16x96xf32>
    %246 = tpu.matmul %244, %245, %cst_110 {dimension_numbers = #tpu.dot_dimension_numbers<[1], [0], [0], [1], [0, 0, 1, 1], [], []>} : vector<16x64xf32>, vector<64x96xf32>, vector<16x96xf32> -> vector<16x96xf32>
    %c0_111 = arith.constant 0 : index
    %c0_112 = arith.constant 0 : index
    %247 = vector.load %arg7[%c0_111, %c0_112] : memref<1x96xf32, #tpu.memory_space<vmem>>, vector<1x96xf32>
    %248 = vector.broadcast %247 : vector<1x96xf32> to vector<16x96xf32>
    %249 = arith.addf %246, %248 : vector<16x96xf32>
    %c0_113 = arith.constant 0 : index
    %c0_114 = arith.constant 0 : index
    %250 = vector.load %arg10[%c0_113, %c0_114] : memref<16x96xf32, #tpu.memory_space<vmem>>, vector<16x96xf32>
    tpu.vector_store %arg10[%c0_113, %c0_114], %249 {strides = array<i32>} : memref<16x96xf32, #tpu.memory_space<vmem>>, vector<16x96xf32>,
    %c0_115 = arith.constant 0 : index
    %c0_116 = arith.constant 0 : index
    %251 = vector.load %arg6[%c0_115, %c0_116] : memref<32x96xf32, #tpu.memory_space<vmem>>, vector<32x96xf32>
    %c0_117 = arith.constant 0 : index
    %c0_118 = arith.constant 0 : index
    %252 = vector.load %arg8[%c0_117, %c0_118] : memref<1x32xf32, #tpu.memory_space<vmem>>, vector<1x32xf32>
    %253 = vector.shape_cast %252 : vector<1x32xf32> to vector<1x32xf32>
    %254 = vector.broadcast %253 : vector<1x32xf32> to vector<2x32xf32>
    %cst_119 = arith.constant 0.000000e+00 : f32
    %255 = vector.broadcast %cst_119 : f32 to vector<2x32xf32>
    %cst_120 = arith.constant dense<0.000000e+00> : vector<2x96xf32>
    %256 = tpu.matmul %255, %251, %cst_120 {dimension_numbers = #tpu.dot_dimension_numbers<[1], [0], [0], [1], [0, 0, 1, 1], [], []>} : vector<2x32xf32>, vector<32x96xf32>, vector<2x96xf32> -> vector<2x96xf32>
    %c0_121 = arith.constant 0 : index
    %c0_122 = arith.constant 0 : index
    %257 = vector.load %arg10[%c0_121, %c0_122] : memref<16x96xf32, #tpu.memory_space<vmem>>, vector<2x96xf32>
    %258 = vector.extract_strided_slice %257 {offsets = [0, 0], sizes = [2, 64], strides = [1, 1]} : vector<2x96xf32> to vector<2x64xf32>
    %259 = vector.extract_strided_slice %256 {offsets = [0, 0], sizes = [2, 64], strides = [1, 1]} : vector<2x96xf32> to vector<2x64xf32>
    %260 = arith.addf %258, %259 : vector<2x64xf32>
    %261 = arith.negf %260 : vector<2x64xf32>
    %262 = math.exp %261 : vector<2x64xf32>
    %cst_123 = arith.constant 1.000000e+00 : f32
    %263 = vector.broadcast %cst_123 : f32 to vector<2x64xf32>
    %264 = arith.addf %263, %262 : vector<2x64xf32>
    %265 = arith.divf %263, %264 : vector<2x64xf32>
    %266 = vector.extract_strided_slice %265 {offsets = [0, 0], sizes = [2, 32], strides = [1, 1]} : vector<2x64xf32> to vector<2x32xf32>
    %267 = vector.extract_strided_slice %265 {offsets = [0, 32], sizes = [2, 32], strides = [1, 1]} : vector<2x64xf32> to vector<2x32xf32>
    %268 = vector.extract_strided_slice %257 {offsets = [0, 64], sizes = [2, 32], strides = [1, 1]} : vector<2x96xf32> to vector<2x32xf32>
    %269 = vector.extract_strided_slice %256 {offsets = [0, 64], sizes = [2, 32], strides = [1, 1]} : vector<2x96xf32> to vector<2x32xf32>
    %270 = arith.addf %269, %254 : vector<2x32xf32>
    %271 = arith.mulf %266, %270 : vector<2x32xf32>
    %272 = arith.addf %268, %271 : vector<2x32xf32>
    %273 = math.tanh %272 : vector<2x32xf32>
    %cst_124 = arith.constant 1.000000e+00 : f32
    %274 = vector.broadcast %cst_124 : f32 to vector<2x32xf32>
    %275 = arith.subf %274, %267 : vector<2x32xf32>
    %276 = arith.mulf %275, %273 : vector<2x32xf32>
    %277 = arith.mulf %267, %255 : vector<2x32xf32>
    %278 = arith.addf %276, %277 : vector<2x32xf32>
    %279 = vector.extract_strided_slice %278 {offsets = [0, 0], sizes = [2, 16], strides = [1, 1]} : vector<2x32xf32> to vector<2x16xf32>
    %c0_125 = arith.constant 0 : index
    %c0_126 = arith.constant 0 : index
    %280 = vector.load %arg9[%c0_125, %c0_126] : memref<16x32xf32, #tpu.memory_space<vmem>>, vector<2x16xf32>
    tpu.vector_store %arg9[%c0_125, %c0_126], %279 {strides = array<i32>} : memref<16x32xf32, #tpu.memory_space<vmem>>, vector<2x16xf32>,
    %281 = vector.extract_strided_slice %278 {offsets = [0, 16], sizes = [2, 16], strides = [1, 1]} : vector<2x32xf32> to vector<2x16xf32>
    %c14_127 = arith.constant 14 : index
    %c16_128 = arith.constant 16 : index
    %282 = vector.load %arg9[%c14_127, %c16_128] : memref<16x32xf32, #tpu.memory_space<vmem>>, vector<2x16xf32>
    tpu.vector_store %arg9[%c14_127, %c16_128], %281 {strides = array<i32>} : memref<16x32xf32, #tpu.memory_space<vmem>>, vector<2x16xf32>,
    %cst_129 = arith.constant dense<0.000000e+00> : vector<2x96xf32>
    %283 = tpu.matmul %278, %251, %cst_129 {dimension_numbers = #tpu.dot_dimension_numbers<[1], [0], [0], [1], [0, 0, 1, 1], [], []>} : vector<2x32xf32>, vector<32x96xf32>, vector<2x96xf32> -> vector<2x96xf32>
    %c2_130 = arith.constant 2 : index
    %c0_131 = arith.constant 0 : index
    %284 = vector.load %arg10[%c2_130, %c0_131] : memref<16x96xf32, #tpu.memory_space<vmem>>, vector<2x96xf32>
    %285 = vector.extract_strided_slice %284 {offsets = [0, 0], sizes = [2, 64], strides = [1, 1]} : vector<2x96xf32> to vector<2x64xf32>
    %286 = vector.extract_strided_slice %283 {offsets = [0, 0], sizes = [2, 64], strides = [1, 1]} : vector<2x96xf32> to vector<2x64xf32>
    %287 = arith.addf %285, %286 : vector<2x64xf32>
    %288 = arith.negf %287 : vector<2x64xf32>
    %289 = math.exp %288 : vector<2x64xf32>
    %cst_132 = arith.constant 1.000000e+00 : f32
    %290 = vector.broadcast %cst_132 : f32 to vector<2x64xf32>
    %291 = arith.addf %290, %289 : vector<2x64xf32>
    %292 = arith.divf %290, %291 : vector<2x64xf32>
    %293 = vector.extract_strided_slice %292 {offsets = [0, 0], sizes = [2, 32], strides = [1, 1]} : vector<2x64xf32> to vector<2x32xf32>
    %294 = vector.extract_strided_slice %292 {offsets = [0, 32], sizes = [2, 32], strides = [1, 1]} : vector<2x64xf32> to vector<2x32xf32>
    %295 = vector.extract_strided_slice %284 {offsets = [0, 64], sizes = [2, 32], strides = [1, 1]} : vector<2x96xf32> to vector<2x32xf32>
    %296 = vector.extract_strided_slice %283 {offsets = [0, 64], sizes = [2, 32], strides = [1, 1]} : vector<2x96xf32> to vector<2x32xf32>
    %297 = arith.addf %296, %254 : vector<2x32xf32>
    %298 = arith.mulf %293, %297 : vector<2x32xf32>
    %299 = arith.addf %295, %298 : vector<2x32xf32>
    %300 = math.tanh %299 : vector<2x32xf32>
    %cst_133 = arith.constant 1.000000e+00 : f32
    %301 = vector.broadcast %cst_133 : f32 to vector<2x32xf32>
    %302 = arith.subf %301, %294 : vector<2x32xf32>
    %303 = arith.mulf %302, %300 : vector<2x32xf32>
    %304 = arith.mulf %294, %278 : vector<2x32xf32>
    %305 = arith.addf %303, %304 : vector<2x32xf32>
    %306 = vector.extract_strided_slice %305 {offsets = [0, 0], sizes = [2, 16], strides = [1, 1]} : vector<2x32xf32> to vector<2x16xf32>
    %c2_134 = arith.constant 2 : index
    %c0_135 = arith.constant 0 : index
    %307 = vector.load %arg9[%c2_134, %c0_135] : memref<16x32xf32, #tpu.memory_space<vmem>>, vector<2x16xf32>
    tpu.vector_store %arg9[%c2_134, %c0_135], %306 {strides = array<i32>} : memref<16x32xf32, #tpu.memory_space<vmem>>, vector<2x16xf32>,
    %308 = vector.extract_strided_slice %305 {offsets = [0, 16], sizes = [2, 16], strides = [1, 1]} : vector<2x32xf32> to vector<2x16xf32>
    %c12_136 = arith.constant 12 : index
    %c16_137 = arith.constant 16 : index
    %309 = vector.load %arg9[%c12_136, %c16_137] : memref<16x32xf32, #tpu.memory_space<vmem>>, vector<2x16xf32>
    tpu.vector_store %arg9[%c12_136, %c16_137], %308 {strides = array<i32>} : memref<16x32xf32, #tpu.memory_space<vmem>>, vector<2x16xf32>,
    %cst_138 = arith.constant dense<0.000000e+00> : vector<2x96xf32>
    %310 = tpu.matmul %305, %251, %cst_138 {dimension_numbers = #tpu.dot_dimension_numbers<[1], [0], [0], [1], [0, 0, 1, 1], [], []>} : vector<2x32xf32>, vector<32x96xf32>, vector<2x96xf32> -> vector<2x96xf32>
    %c4_139 = arith.constant 4 : index
    %c0_140 = arith.constant 0 : index
    %311 = vector.load %arg10[%c4_139, %c0_140] : memref<16x96xf32, #tpu.memory_space<vmem>>, vector<2x96xf32>
    %312 = vector.extract_strided_slice %311 {offsets = [0, 0], sizes = [2, 64], strides = [1, 1]} : vector<2x96xf32> to vector<2x64xf32>
    %313 = vector.extract_strided_slice %310 {offsets = [0, 0], sizes = [2, 64], strides = [1, 1]} : vector<2x96xf32> to vector<2x64xf32>
    %314 = arith.addf %312, %313 : vector<2x64xf32>
    %315 = arith.negf %314 : vector<2x64xf32>
    %316 = math.exp %315 : vector<2x64xf32>
    %cst_141 = arith.constant 1.000000e+00 : f32
    %317 = vector.broadcast %cst_141 : f32 to vector<2x64xf32>
    %318 = arith.addf %317, %316 : vector<2x64xf32>
    %319 = arith.divf %317, %318 : vector<2x64xf32>
    %320 = vector.extract_strided_slice %319 {offsets = [0, 0], sizes = [2, 32], strides = [1, 1]} : vector<2x64xf32> to vector<2x32xf32>
    %321 = vector.extract_strided_slice %319 {offsets = [0, 32], sizes = [2, 32], strides = [1, 1]} : vector<2x64xf32> to vector<2x32xf32>
    %322 = vector.extract_strided_slice %311 {offsets = [0, 64], sizes = [2, 32], strides = [1, 1]} : vector<2x96xf32> to vector<2x32xf32>
    %323 = vector.extract_strided_slice %310 {offsets = [0, 64], sizes = [2, 32], strides = [1, 1]} : vector<2x96xf32> to vector<2x32xf32>
    %324 = arith.addf %323, %254 : vector<2x32xf32>
    %325 = arith.mulf %320, %324 : vector<2x32xf32>
    %326 = arith.addf %322, %325 : vector<2x32xf32>
    %327 = math.tanh %326 : vector<2x32xf32>
    %cst_142 = arith.constant 1.000000e+00 : f32
    %328 = vector.broadcast %cst_142 : f32 to vector<2x32xf32>
    %329 = arith.subf %328, %321 : vector<2x32xf32>
    %330 = arith.mulf %329, %327 : vector<2x32xf32>
    %331 = arith.mulf %321, %305 : vector<2x32xf32>
    %332 = arith.addf %330, %331 : vector<2x32xf32>
    %333 = vector.extract_strided_slice %332 {offsets = [0, 0], sizes = [2, 16], strides = [1, 1]} : vector<2x32xf32> to vector<2x16xf32>
    %c4_143 = arith.constant 4 : index
    %c0_144 = arith.constant 0 : index
    %334 = vector.load %arg9[%c4_143, %c0_144] : memref<16x32xf32, #tpu.memory_space<vmem>>, vector<2x16xf32>
    tpu.vector_store %arg9[%c4_143, %c0_144], %333 {strides = array<i32>} : memref<16x32xf32, #tpu.memory_space<vmem>>, vector<2x16xf32>,
    %335 = vector.extract_strided_slice %332 {offsets = [0, 16], sizes = [2, 16], strides = [1, 1]} : vector<2x32xf32> to vector<2x16xf32>
    %c10_145 = arith.constant 10 : index
    %c16_146 = arith.constant 16 : index
    %336 = vector.load %arg9[%c10_145, %c16_146] : memref<16x32xf32, #tpu.memory_space<vmem>>, vector<2x16xf32>
    tpu.vector_store %arg9[%c10_145, %c16_146], %335 {strides = array<i32>} : memref<16x32xf32, #tpu.memory_space<vmem>>, vector<2x16xf32>,
    %cst_147 = arith.constant dense<0.000000e+00> : vector<2x96xf32>
    %337 = tpu.matmul %332, %251, %cst_147 {dimension_numbers = #tpu.dot_dimension_numbers<[1], [0], [0], [1], [0, 0, 1, 1], [], []>} : vector<2x32xf32>, vector<32x96xf32>, vector<2x96xf32> -> vector<2x96xf32>
    %c6_148 = arith.constant 6 : index
    %c0_149 = arith.constant 0 : index
    %338 = vector.load %arg10[%c6_148, %c0_149] : memref<16x96xf32, #tpu.memory_space<vmem>>, vector<2x96xf32>
    %339 = vector.extract_strided_slice %338 {offsets = [0, 0], sizes = [2, 64], strides = [1, 1]} : vector<2x96xf32> to vector<2x64xf32>
    %340 = vector.extract_strided_slice %337 {offsets = [0, 0], sizes = [2, 64], strides = [1, 1]} : vector<2x96xf32> to vector<2x64xf32>
    %341 = arith.addf %339, %340 : vector<2x64xf32>
    %342 = arith.negf %341 : vector<2x64xf32>
    %343 = math.exp %342 : vector<2x64xf32>
    %cst_150 = arith.constant 1.000000e+00 : f32
    %344 = vector.broadcast %cst_150 : f32 to vector<2x64xf32>
    %345 = arith.addf %344, %343 : vector<2x64xf32>
    %346 = arith.divf %344, %345 : vector<2x64xf32>
    %347 = vector.extract_strided_slice %346 {offsets = [0, 0], sizes = [2, 32], strides = [1, 1]} : vector<2x64xf32> to vector<2x32xf32>
    %348 = vector.extract_strided_slice %346 {offsets = [0, 32], sizes = [2, 32], strides = [1, 1]} : vector<2x64xf32> to vector<2x32xf32>
    %349 = vector.extract_strided_slice %338 {offsets = [0, 64], sizes = [2, 32], strides = [1, 1]} : vector<2x96xf32> to vector<2x32xf32>
    %350 = vector.extract_strided_slice %337 {offsets = [0, 64], sizes = [2, 32], strides = [1, 1]} : vector<2x96xf32> to vector<2x32xf32>
    %351 = arith.addf %350, %254 : vector<2x32xf32>
    %352 = arith.mulf %347, %351 : vector<2x32xf32>
    %353 = arith.addf %349, %352 : vector<2x32xf32>
    %354 = math.tanh %353 : vector<2x32xf32>
    %cst_151 = arith.constant 1.000000e+00 : f32
    %355 = vector.broadcast %cst_151 : f32 to vector<2x32xf32>
    %356 = arith.subf %355, %348 : vector<2x32xf32>
    %357 = arith.mulf %356, %354 : vector<2x32xf32>
    %358 = arith.mulf %348, %332 : vector<2x32xf32>
    %359 = arith.addf %357, %358 : vector<2x32xf32>
    %360 = vector.extract_strided_slice %359 {offsets = [0, 0], sizes = [2, 16], strides = [1, 1]} : vector<2x32xf32> to vector<2x16xf32>
    %c6_152 = arith.constant 6 : index
    %c0_153 = arith.constant 0 : index
    %361 = vector.load %arg9[%c6_152, %c0_153] : memref<16x32xf32, #tpu.memory_space<vmem>>, vector<2x16xf32>
    tpu.vector_store %arg9[%c6_152, %c0_153], %360 {strides = array<i32>} : memref<16x32xf32, #tpu.memory_space<vmem>>, vector<2x16xf32>,
    %362 = vector.extract_strided_slice %359 {offsets = [0, 16], sizes = [2, 16], strides = [1, 1]} : vector<2x32xf32> to vector<2x16xf32>
    %c8_154 = arith.constant 8 : index
    %c16_155 = arith.constant 16 : index
    %363 = vector.load %arg9[%c8_154, %c16_155] : memref<16x32xf32, #tpu.memory_space<vmem>>, vector<2x16xf32>
    tpu.vector_store %arg9[%c8_154, %c16_155], %362 {strides = array<i32>} : memref<16x32xf32, #tpu.memory_space<vmem>>, vector<2x16xf32>,
    %cst_156 = arith.constant dense<0.000000e+00> : vector<2x96xf32>
    %364 = tpu.matmul %359, %251, %cst_156 {dimension_numbers = #tpu.dot_dimension_numbers<[1], [0], [0], [1], [0, 0, 1, 1], [], []>} : vector<2x32xf32>, vector<32x96xf32>, vector<2x96xf32> -> vector<2x96xf32>
    %c8_157 = arith.constant 8 : index
    %c0_158 = arith.constant 0 : index
    %365 = vector.load %arg10[%c8_157, %c0_158] : memref<16x96xf32, #tpu.memory_space<vmem>>, vector<2x96xf32>
    %366 = vector.extract_strided_slice %365 {offsets = [0, 0], sizes = [2, 64], strides = [1, 1]} : vector<2x96xf32> to vector<2x64xf32>
    %367 = vector.extract_strided_slice %364 {offsets = [0, 0], sizes = [2, 64], strides = [1, 1]} : vector<2x96xf32> to vector<2x64xf32>
    %368 = arith.addf %366, %367 : vector<2x64xf32>
    %369 = arith.negf %368 : vector<2x64xf32>
    %370 = math.exp %369 : vector<2x64xf32>
    %cst_159 = arith.constant 1.000000e+00 : f32
    %371 = vector.broadcast %cst_159 : f32 to vector<2x64xf32>
    %372 = arith.addf %371, %370 : vector<2x64xf32>
    %373 = arith.divf %371, %372 : vector<2x64xf32>
    %374 = vector.extract_strided_slice %373 {offsets = [0, 0], sizes = [2, 32], strides = [1, 1]} : vector<2x64xf32> to vector<2x32xf32>
    %375 = vector.extract_strided_slice %373 {offsets = [0, 32], sizes = [2, 32], strides = [1, 1]} : vector<2x64xf32> to vector<2x32xf32>
    %376 = vector.extract_strided_slice %365 {offsets = [0, 64], sizes = [2, 32], strides = [1, 1]} : vector<2x96xf32> to vector<2x32xf32>
    %377 = vector.extract_strided_slice %364 {offsets = [0, 64], sizes = [2, 32], strides = [1, 1]} : vector<2x96xf32> to vector<2x32xf32>
    %378 = arith.addf %377, %254 : vector<2x32xf32>
    %379 = arith.mulf %374, %378 : vector<2x32xf32>
    %380 = arith.addf %376, %379 : vector<2x32xf32>
    %381 = math.tanh %380 : vector<2x32xf32>
    %cst_160 = arith.constant 1.000000e+00 : f32
    %382 = vector.broadcast %cst_160 : f32 to vector<2x32xf32>
    %383 = arith.subf %382, %375 : vector<2x32xf32>
    %384 = arith.mulf %383, %381 : vector<2x32xf32>
    %385 = arith.mulf %375, %359 : vector<2x32xf32>
    %386 = arith.addf %384, %385 : vector<2x32xf32>
    %387 = vector.extract_strided_slice %386 {offsets = [0, 0], sizes = [2, 16], strides = [1, 1]} : vector<2x32xf32> to vector<2x16xf32>
    %c8_161 = arith.constant 8 : index
    %c0_162 = arith.constant 0 : index
    %388 = vector.load %arg9[%c8_161, %c0_162] : memref<16x32xf32, #tpu.memory_space<vmem>>, vector<2x16xf32>
    tpu.vector_store %arg9[%c8_161, %c0_162], %387 {strides = array<i32>} : memref<16x32xf32, #tpu.memory_space<vmem>>, vector<2x16xf32>,
    %389 = vector.extract_strided_slice %386 {offsets = [0, 16], sizes = [2, 16], strides = [1, 1]} : vector<2x32xf32> to vector<2x16xf32>
    %c6_163 = arith.constant 6 : index
    %c16_164 = arith.constant 16 : index
    %390 = vector.load %arg9[%c6_163, %c16_164] : memref<16x32xf32, #tpu.memory_space<vmem>>, vector<2x16xf32>
    tpu.vector_store %arg9[%c6_163, %c16_164], %389 {strides = array<i32>} : memref<16x32xf32, #tpu.memory_space<vmem>>, vector<2x16xf32>,
    %cst_165 = arith.constant dense<0.000000e+00> : vector<2x96xf32>
    %391 = tpu.matmul %386, %251, %cst_165 {dimension_numbers = #tpu.dot_dimension_numbers<[1], [0], [0], [1], [0, 0, 1, 1], [], []>} : vector<2x32xf32>, vector<32x96xf32>, vector<2x96xf32> -> vector<2x96xf32>
    %c10_166 = arith.constant 10 : index
    %c0_167 = arith.constant 0 : index
    %392 = vector.load %arg10[%c10_166, %c0_167] : memref<16x96xf32, #tpu.memory_space<vmem>>, vector<2x96xf32>
    %393 = vector.extract_strided_slice %392 {offsets = [0, 0], sizes = [2, 64], strides = [1, 1]} : vector<2x96xf32> to vector<2x64xf32>
    %394 = vector.extract_strided_slice %391 {offsets = [0, 0], sizes = [2, 64], strides = [1, 1]} : vector<2x96xf32> to vector<2x64xf32>
    %395 = arith.addf %393, %394 : vector<2x64xf32>
    %396 = arith.negf %395 : vector<2x64xf32>
    %397 = math.exp %396 : vector<2x64xf32>
    %cst_168 = arith.constant 1.000000e+00 : f32
    %398 = vector.broadcast %cst_168 : f32 to vector<2x64xf32>
    %399 = arith.addf %398, %397 : vector<2x64xf32>
    %400 = arith.divf %398, %399 : vector<2x64xf32>
    %401 = vector.extract_strided_slice %400 {offsets = [0, 0], sizes = [2, 32], strides = [1, 1]} : vector<2x64xf32> to vector<2x32xf32>
    %402 = vector.extract_strided_slice %400 {offsets = [0, 32], sizes = [2, 32], strides = [1, 1]} : vector<2x64xf32> to vector<2x32xf32>
    %403 = vector.extract_strided_slice %392 {offsets = [0, 64], sizes = [2, 32], strides = [1, 1]} : vector<2x96xf32> to vector<2x32xf32>
    %404 = vector.extract_strided_slice %391 {offsets = [0, 64], sizes = [2, 32], strides = [1, 1]} : vector<2x96xf32> to vector<2x32xf32>
    %405 = arith.addf %404, %254 : vector<2x32xf32>
    %406 = arith.mulf %401, %405 : vector<2x32xf32>
    %407 = arith.addf %403, %406 : vector<2x32xf32>
    %408 = math.tanh %407 : vector<2x32xf32>
    %cst_169 = arith.constant 1.000000e+00 : f32
    %409 = vector.broadcast %cst_169 : f32 to vector<2x32xf32>
    %410 = arith.subf %409, %402 : vector<2x32xf32>
    %411 = arith.mulf %410, %408 : vector<2x32xf32>
    %412 = arith.mulf %402, %386 : vector<2x32xf32>
    %413 = arith.addf %411, %412 : vector<2x32xf32>
    %414 = vector.extract_strided_slice %413 {offsets = [0, 0], sizes = [2, 16], strides = [1, 1]} : vector<2x32xf32> to vector<2x16xf32>
    %c10_170 = arith.constant 10 : index
    %c0_171 = arith.constant 0 : index
    %415 = vector.load %arg9[%c10_170, %c0_171] : memref<16x32xf32, #tpu.memory_space<vmem>>, vector<2x16xf32>
    tpu.vector_store %arg9[%c10_170, %c0_171], %414 {strides = array<i32>} : memref<16x32xf32, #tpu.memory_space<vmem>>, vector<2x16xf32>,
    %416 = vector.extract_strided_slice %413 {offsets = [0, 16], sizes = [2, 16], strides = [1, 1]} : vector<2x32xf32> to vector<2x16xf32>
    %c4_172 = arith.constant 4 : index
    %c16_173 = arith.constant 16 : index
    %417 = vector.load %arg9[%c4_172, %c16_173] : memref<16x32xf32, #tpu.memory_space<vmem>>, vector<2x16xf32>
    tpu.vector_store %arg9[%c4_172, %c16_173], %416 {strides = array<i32>} : memref<16x32xf32, #tpu.memory_space<vmem>>, vector<2x16xf32>,
    %cst_174 = arith.constant dense<0.000000e+00> : vector<2x96xf32>
    %418 = tpu.matmul %413, %251, %cst_174 {dimension_numbers = #tpu.dot_dimension_numbers<[1], [0], [0], [1], [0, 0, 1, 1], [], []>} : vector<2x32xf32>, vector<32x96xf32>, vector<2x96xf32> -> vector<2x96xf32>
    %c12_175 = arith.constant 12 : index
    %c0_176 = arith.constant 0 : index
    %419 = vector.load %arg10[%c12_175, %c0_176] : memref<16x96xf32, #tpu.memory_space<vmem>>, vector<2x96xf32>
    %420 = vector.extract_strided_slice %419 {offsets = [0, 0], sizes = [2, 64], strides = [1, 1]} : vector<2x96xf32> to vector<2x64xf32>
    %421 = vector.extract_strided_slice %418 {offsets = [0, 0], sizes = [2, 64], strides = [1, 1]} : vector<2x96xf32> to vector<2x64xf32>
    %422 = arith.addf %420, %421 : vector<2x64xf32>
    %423 = arith.negf %422 : vector<2x64xf32>
    %424 = math.exp %423 : vector<2x64xf32>
    %cst_177 = arith.constant 1.000000e+00 : f32
    %425 = vector.broadcast %cst_177 : f32 to vector<2x64xf32>
    %426 = arith.addf %425, %424 : vector<2x64xf32>
    %427 = arith.divf %425, %426 : vector<2x64xf32>
    %428 = vector.extract_strided_slice %427 {offsets = [0, 0], sizes = [2, 32], strides = [1, 1]} : vector<2x64xf32> to vector<2x32xf32>
    %429 = vector.extract_strided_slice %427 {offsets = [0, 32], sizes = [2, 32], strides = [1, 1]} : vector<2x64xf32> to vector<2x32xf32>
    %430 = vector.extract_strided_slice %419 {offsets = [0, 64], sizes = [2, 32], strides = [1, 1]} : vector<2x96xf32> to vector<2x32xf32>
    %431 = vector.extract_strided_slice %418 {offsets = [0, 64], sizes = [2, 32], strides = [1, 1]} : vector<2x96xf32> to vector<2x32xf32>
    %432 = arith.addf %431, %254 : vector<2x32xf32>
    %433 = arith.mulf %428, %432 : vector<2x32xf32>
    %434 = arith.addf %430, %433 : vector<2x32xf32>
    %435 = math.tanh %434 : vector<2x32xf32>
    %cst_178 = arith.constant 1.000000e+00 : f32
    %436 = vector.broadcast %cst_178 : f32 to vector<2x32xf32>
    %437 = arith.subf %436, %429 : vector<2x32xf32>
    %438 = arith.mulf %437, %435 : vector<2x32xf32>
    %439 = arith.mulf %429, %413 : vector<2x32xf32>
    %440 = arith.addf %438, %439 : vector<2x32xf32>
    %441 = vector.extract_strided_slice %440 {offsets = [0, 0], sizes = [2, 16], strides = [1, 1]} : vector<2x32xf32> to vector<2x16xf32>
    %c12_179 = arith.constant 12 : index
    %c0_180 = arith.constant 0 : index
    %442 = vector.load %arg9[%c12_179, %c0_180] : memref<16x32xf32, #tpu.memory_space<vmem>>, vector<2x16xf32>
    tpu.vector_store %arg9[%c12_179, %c0_180], %441 {strides = array<i32>} : memref<16x32xf32, #tpu.memory_space<vmem>>, vector<2x16xf32>,
    %443 = vector.extract_strided_slice %440 {offsets = [0, 16], sizes = [2, 16], strides = [1, 1]} : vector<2x32xf32> to vector<2x16xf32>
    %c2_181 = arith.constant 2 : index
    %c16_182 = arith.constant 16 : index
    %444 = vector.load %arg9[%c2_181, %c16_182] : memref<16x32xf32, #tpu.memory_space<vmem>>, vector<2x16xf32>
    tpu.vector_store %arg9[%c2_181, %c16_182], %443 {strides = array<i32>} : memref<16x32xf32, #tpu.memory_space<vmem>>, vector<2x16xf32>,
    %cst_183 = arith.constant dense<0.000000e+00> : vector<2x96xf32>
    %445 = tpu.matmul %440, %251, %cst_183 {dimension_numbers = #tpu.dot_dimension_numbers<[1], [0], [0], [1], [0, 0, 1, 1], [], []>} : vector<2x32xf32>, vector<32x96xf32>, vector<2x96xf32> -> vector<2x96xf32>
    %c14_184 = arith.constant 14 : index
    %c0_185 = arith.constant 0 : index
    %446 = vector.load %arg10[%c14_184, %c0_185] : memref<16x96xf32, #tpu.memory_space<vmem>>, vector<2x96xf32>
    %447 = vector.extract_strided_slice %446 {offsets = [0, 0], sizes = [2, 64], strides = [1, 1]} : vector<2x96xf32> to vector<2x64xf32>
    %448 = vector.extract_strided_slice %445 {offsets = [0, 0], sizes = [2, 64], strides = [1, 1]} : vector<2x96xf32> to vector<2x64xf32>
    %449 = arith.addf %447, %448 : vector<2x64xf32>
    %450 = arith.negf %449 : vector<2x64xf32>
    %451 = math.exp %450 : vector<2x64xf32>
    %cst_186 = arith.constant 1.000000e+00 : f32
    %452 = vector.broadcast %cst_186 : f32 to vector<2x64xf32>
    %453 = arith.addf %452, %451 : vector<2x64xf32>
    %454 = arith.divf %452, %453 : vector<2x64xf32>
    %455 = vector.extract_strided_slice %454 {offsets = [0, 0], sizes = [2, 32], strides = [1, 1]} : vector<2x64xf32> to vector<2x32xf32>
    %456 = vector.extract_strided_slice %454 {offsets = [0, 32], sizes = [2, 32], strides = [1, 1]} : vector<2x64xf32> to vector<2x32xf32>
    %457 = vector.extract_strided_slice %446 {offsets = [0, 64], sizes = [2, 32], strides = [1, 1]} : vector<2x96xf32> to vector<2x32xf32>
    %458 = vector.extract_strided_slice %445 {offsets = [0, 64], sizes = [2, 32], strides = [1, 1]} : vector<2x96xf32> to vector<2x32xf32>
    %459 = arith.addf %458, %254 : vector<2x32xf32>
    %460 = arith.mulf %455, %459 : vector<2x32xf32>
    %461 = arith.addf %457, %460 : vector<2x32xf32>
    %462 = math.tanh %461 : vector<2x32xf32>
    %cst_187 = arith.constant 1.000000e+00 : f32
    %463 = vector.broadcast %cst_187 : f32 to vector<2x32xf32>
    %464 = arith.subf %463, %456 : vector<2x32xf32>
    %465 = arith.mulf %464, %462 : vector<2x32xf32>
    %466 = arith.mulf %456, %440 : vector<2x32xf32>
    %467 = arith.addf %465, %466 : vector<2x32xf32>
    %468 = vector.extract_strided_slice %467 {offsets = [0, 0], sizes = [2, 16], strides = [1, 1]} : vector<2x32xf32> to vector<2x16xf32>
    %c14_188 = arith.constant 14 : index
    %c0_189 = arith.constant 0 : index
    %469 = vector.load %arg9[%c14_188, %c0_189] : memref<16x32xf32, #tpu.memory_space<vmem>>, vector<2x16xf32>
    tpu.vector_store %arg9[%c14_188, %c0_189], %468 {strides = array<i32>} : memref<16x32xf32, #tpu.memory_space<vmem>>, vector<2x16xf32>,
    %470 = vector.extract_strided_slice %467 {offsets = [0, 16], sizes = [2, 16], strides = [1, 1]} : vector<2x32xf32> to vector<2x16xf32>
    %c0_190 = arith.constant 0 : index
    %c16_191 = arith.constant 16 : index
    %471 = vector.load %arg9[%c0_190, %c16_191] : memref<16x32xf32, #tpu.memory_space<vmem>>, vector<2x16xf32>
    tpu.vector_store %arg9[%c0_190, %c16_191], %470 {strides = array<i32>} : memref<16x32xf32, #tpu.memory_space<vmem>>, vector<2x16xf32>,
    return
  }
}

</mosaic_0001>

<bundles_post_ra>
// kernel: gru_original_encoder.1
= control target key start
LH: loop header
LB: loop body
LE: loop exit
PB: predicated region body
PF: predicated region fallthrough
CT: control target
= control target key end

     0   :  { %v2537_v0 = vmov 0.0|0.0   ;;  %vm2538_vm0 = vmmov 0   ;;  %v2539_v4 = vmov 0.0   ;;  %vm45_vm1 = vcmask 261120   ;;  %s2984_s1 = inlined_call_operand.vmem [shape: f32[32,96], index: 1, kind: input, shape index: {}]   ;;  %s2985_s2 = inlined_call_operand.vmem [shape: f32[32,96], index: 2, kind: input, shape index: {}]   ;;  %s2986_s0 = inlined_call_operand.vmem [shape: f32[16,32], index: 0, kind: input, shape index: {}]   ;;  %s2987_s4 = inlined_call_operand.vmem [shape: f32[1,32], index: 4, kind: input, shape index: {}]   ;;  %s2988_s3 = inlined_call_operand.vmem [shape: f32[1,96], index: 3, kind: input, shape index: {}]   ;;  %s2989_s6 = inlined_call_operand.vmem [shape: f32[32,96], index: 6, kind: input, shape index: {}]   ;;  %s2990_s5 = inlined_call_operand.vmem [shape: f32[64,96], index: 5, kind: input, shape index: {}]   ;;  %s2991_s8 = inlined_call_operand.vmem [shape: f32[1,32], index: 8, kind: input, shape index: {}]   ;;  %s2992_s7 = inlined_call_operand.vmem [shape: f32[1,96], index: 7, kind: input, shape index: {}]   ;;  %s2993_s9 = inlined_call_operand.vmem [shape: f32[16,32], index: 9, kind: output, shape index: {}]  }
   0x1   :  { %2324 = vmatprep.subr.bf16.mxu1 %v2537_v0  ;;  %v34_v1 = vld [vmem:[%s2984_s1] sm:$0xff]  ;;  %v35_v2 = vld [vmem:[%s2984_s1 + $0x8] sm:$0xff]  ;;  %2129 = vmatprep.mubr.msk.f32.mxu1 %vm2538_vm0, %v2539_v4  ;;  %v36_v7 = vld [vmem:[%s2984_s1 + $0x10] sm:$0xff]  ;;  %vm127_vm2 = vcmask 785408   ;;  %vm250_vm3 = vcmask 386304   ;;  %vm248_vm4 = vcmask 123904  }
   0x2   :  { %v130_v3 = vld [vmem:[%s2985_s2] sm:$0xff]  ;;  %v2316_v5 = vpack.c.bf16 %v35_v2, %v34_v1  ;;  %v131_v6 = vld [vmem:[%s2985_s2 + $0x8] sm:$0xff]  ;;  %v37_v8 = vld [vmem:[%s2984_s1 + $0x18] sm:$0xff]  ;;  %vm252_vm5 = vcmask 255104   ;;  %vm254_vm6 = vcmask 517504   ;;  %vm1029_vm7 = vcmask 523264  }
   0x3   :  { %v2613_v9 = vpack.c.bf16 %v131_v6, %v130_v3  ;;  %v2320_v10 = vpack.c.bf16 %v37_v8, %v36_v7  ;;  %v132_v11 = vld [vmem:[%s2985_s2 + $0x10] sm:$0xff]  ;;  %v133_v12 = vld [vmem:[%s2985_s2 + $0x18] sm:$0xff]  ;;  %v32_v13 = vld [vmem:[%s2986_s0] sm:$0xff]  ;;  %s2540_s2 = smov 64  }
   0x4   :  { %2317 = vmatprep.subr.bf16.mxu0 %v2316_v5  ;;  %2118 = vmatprep.mubr.msk.f32.mxu0 %vm45_vm1, %v32_v13  ;;  %v1979_v14 = vld [vmem:[%s2987_s4] ss:$0 sm:$0xff]  ;;  %v2629_v15 = vpack.c.bf16 %v133_v12, %v132_v11  ;;  %v33_v16 = vld [vmem:[%s2986_s0 + $0x8] sm:$0xff] }
   0x5   :  { %2326 = vmatpush3.bf16.msra.mxu1 %v2613_v9  ;;  %2319 = vmatpush3.bf16.msra.mxu0 %v2316_v5  ;;  %v1976_v18 = vld [vmem:[%s2988_s3] ss:$0 sm:$0xff]  ;;  %s2541_s3 = smov 96  }
   0x6   :  { %2327 = vmatprep.subr.bf16.mxu1 %v2537_v0  ;;  %2321 = vmatprep.subr.bf16.mxu0 %v2320_v10 }
   0x7   :  { %221 = vrot.lane.b32.xlu0 %v1979_v14, %s2540_s2 }
   0x9   :  { %2329 = vmatpush3.bf16.msra.mxu1 %v2629_v15  ;;  %2323 = vmatpush3.bf16.msra.mxu0 %v2320_v10 }
   0xa   :  { %2330 = vmatprep.subr.bf16.mxu0 %v2537_v0  ;;  %2336 = vmatprep.subr.bf16.mxu1 %v2537_v0 }
   0xc   :  { %2130 = vmatmul.mubr.f32.vlgmr.msra.gmra.mrb[0].mxu1 %v2539_v4  ;;  %2119 = vmatmul.mubr.msk.f32.vlgmr.msra.gmra.mrb[0].mxu0 %vm45_vm1, %v33_v16 }
   0xd   :  { %2332 = vmatpush3.bf16.msra.mxu0 %v2613_v9  ;;  %2140 = vmatprep.mubr.msk.f32.mxu0 %vm2538_vm0, %v2539_v4 }
   0xe   :  { %2333 = vmatprep.subr.bf16.mxu0 %v2537_v0  ;;  %2338 = vmatpush3.bf16.msra.mxu1 %v2613_v9 }
   0xf   :  { %2339 = vmatprep.subr.bf16.mxu1 %v2537_v0  ;;  %2151 = vmatprep.mubr.msk.f32.mxu1 %vm2538_vm0, %v2539_v4 }
  0x11   :  { %2335 = vmatpush3.bf16.msra.mxu0 %v2629_v15 }
  0x12   :  { %2341 = vmatpush3.bf16.msra.mxu1 %v2629_v15  ;;  %2342 = vmatprep.subr.bf16.mxu0 %v2537_v0 }
  0x13   :  { %2348 = vmatprep.subr.bf16.mxu1 %v2537_v0 }
  0x79   :  { %v2653_v17 = vpop.permute.xlu0 %221 }
  0xdf   :  { %v209_v19 = vpop.f32.mrb[0].mxu1  ;;  %v2120_v20 = vpop.f32.mrb[0].mxu0 }
  0xe0   :  { %v224_v21 = vadd.f32 %v2653_v17, %v209_v19  ;;  %v124_v22 = vadd.f32 %v2120_v20, %v1976_v18  ;;  %v2131_v23 = vpop.f32.mrb[1].mxu1  ;;  %v118_v24 = vpop.f32.mrb[1].mxu0 }
  0xe1   :  { %v119_v25 = vadd.f32 %v1976_v18, %v118_v24 }
  0xe2   :  { %129 = vst.msk [vmem:[#allocation2 + $0x8] sm:$0xff] %vm127_vm2, %v124_v22  ;;  %226 = vrot.lane.b32.xlu0 %v224_v21, %s2540_s2 }
  0xe3   :  { %128 = vst.msk [vmem:[#allocation2] sm:$0xff] %vm127_vm2, %v119_v25 }
  0xea   :  { %v213_v26 = vld [vmem:[#allocation2] sm:$0x3]  ;;  %v328_v46 = vld [vmem:[#allocation2 + $0x2] sm:$0x3]  ;;  %v436_v3 = vld [vmem:[#allocation2 + $0x4] sm:$0x3] }
  0xeb   :  { %v214_v27 = vadd.f32 %v213_v26, %v209_v19 }
  0xed   :  { %v1980_v28 = vmul.f32 -1.442695, %v214_v27  ;;  %v544_v27 = vld [vmem:[#allocation2 + $0x6] sm:$0x3] }
  0xef   :  { %2441 = vpow2.f32 %v1980_v28 }
  0xf9   :  { %v2442_v29 = vpop.eup %2441 }
  0xfa   :  { %v218_v30 = vadd.f32 1.0, %v2442_v29 }
  0xfc   :  { %2443 = vrcp.f32 %v218_v30 }
 0x106   :  { %v2444_v31 = vpop.eup %2443 }
 0x107   :  { %v236_v37 = vsub.f32 1.0, %v2444_v31  ;;  %v242_v39 = vmul.f32 0.0, %v2444_v31 }
 0x154   :  { %v227_v32 = vpop.permute.xlu0 %226 }
 0x155   :  { %v229_v33 = vmul.f32 %v2444_v31, %v227_v32 }
 0x157   :  { %231 = vrot.lane.b32.xlu1 %v229_v33, %s2540_s2 }
 0x1c9   :  { %v232_v34 = vpop.permute.xlu1 %231 }
 0x1ca   :  { %v234_v35 = vadd.f32 %v232_v34, %v213_v26 }
 0x1cc   :  { %2445 = vtanh.f32 %v234_v35 }
 0x1d6   :  { %v2446_v36 = vpop.eup %2445 }
 0x1d7   :  { %238 = vrot.lane.b32.xlu1 %v2446_v36, %s2541_s3 }
 0x249   :  { %v239_v38 = vpop.permute.xlu1 %238 }
 0x24a   :  { %v241_v40 = vmul.f32 %v239_v38, %v236_v37 }
 0x24c   :  { %v243_v41 = vadd.f32 %v242_v39, %v241_v40 }
 0x24e   :  { %245 = vrot.lane.b32.xlu0 %v243_v41, %s2541_s3  ;;  %251 = vst.msk [vmem:[#allocation3 + $0xe] sm:$0x3] %vm250_vm3, %v243_v41 }
 0x2c0   :  { %v246_v42 = vpop.permute.xlu0 %245 }
 0x2c1   :  { %249 = vst.msk [vmem:[#allocation3] sm:$0x3] %vm248_vm4, %v246_v42  ;;  %2141 = vmatmul.mubr.msk.f32.vlgmr.msra.gmra.mrb[2].mxu0 %vm45_vm1, %v246_v42 }
 0x2c2   :  { %253 = vst.msk [vmem:[#allocation3 + $0xe] sm:$0x3] %vm252_vm5, %v246_v42  ;;  %2344 = vmatpush3.bf16.msra.mxu0 %v2613_v9  ;;  %2162 = vmatprep.mubr.msk.f32.mxu0 %vm2538_vm0, %v2539_v4 }
 0x2c3   :  { %255 = vst.msk [vmem:[#allocation3] sm:$0x3] %vm254_vm6, %v243_v41  ;;  %2345 = vmatprep.subr.bf16.mxu0 %v2537_v0 }
 0x2c6   :  { %2347 = vmatpush3.bf16.msra.mxu0 %v2629_v15 }
 0x2c7   :  { %2354 = vmatprep.subr.bf16.mxu0 %v2537_v0 }
 0x394   :  { %v324_v43 = vpop.f32.mrb[2].mxu0 }
 0x395   :  { %v336_v44 = vadd.f32 %v324_v43, %v2653_v17  ;;  %v2142_v45 = vpop.f32.mrb[3].mxu0  ;;  %v329_v47 = vadd.f32 %v328_v46, %v324_v43 }
 0x397   :  { %338 = vrot.lane.b32.xlu1 %v336_v44, %s2540_s2  ;;  %v1982_v48 = vmul.f32 -1.442695, %v329_v47  ;;  %v652_v47 = vld [vmem:[#allocation2 + $0x8] sm:$0x3] }
 0x399   :  { %2447 = vpow2.f32 %v1982_v48 }
 0x3a3   :  { %v2448_v49 = vpop.eup %2447 }
 0x3a4   :  { %v333_v50 = vadd.f32 1.0, %v2448_v49 }
 0x3a6   :  { %2449 = vrcp.f32 %v333_v50 }
 0x3b0   :  { %v2450_v51 = vpop.eup %2449 }
 0x3b1   :  { %v348_v57 = vsub.f32 1.0, %v2450_v51  ;;  %v354_v59 = vmul.f32 %v2450_v51, %v243_v41 }
 0x409   :  { %v339_v52 = vpop.permute.xlu1 %338 }
 0x40a   :  { %v341_v53 = vmul.f32 %v2450_v51, %v339_v52 }
 0x40c   :  { %343 = vrot.lane.b32.xlu0 %v341_v53, %s2540_s2 }
 0x47e   :  { %v344_v54 = vpop.permute.xlu0 %343 }
 0x47f   :  { %v346_v55 = vadd.f32 %v344_v54, %v328_v46 }
 0x481   :  { %2451 = vtanh.f32 %v346_v55 }
 0x48b   :  { %v2452_v56 = vpop.eup %2451 }
 0x48c   :  { %350 = vrot.lane.b32.xlu1 %v2452_v56, %s2541_s3 }
 0x4fe   :  { %v351_v58 = vpop.permute.xlu1 %350 }
 0x4ff   :  { %v353_v60 = vmul.f32 %v351_v58, %v348_v57 }
 0x501   :  { %v355_v61 = vadd.f32 %v354_v59, %v353_v60 }
 0x503   :  { %361 = vst.msk [vmem:[#allocation3 + $0xc] sm:$0x3] %vm250_vm3, %v355_v61  ;;  %357 = vrot.lane.b32.xlu0 %v355_v61, %s2541_s3 }
 0x575   :  { %v358_v62 = vpop.permute.xlu0 %357 }
 0x576   :  { %360 = vst.msk [vmem:[#allocation3 + $0x2] sm:$0x3] %vm248_vm4, %v358_v62  ;;  %2152 = vmatmul.mubr.msk.f32.vlgmr.msra.gmra.mrb[2].mxu1 %vm45_vm1, %v358_v62 }
 0x577   :  { %362 = vst.msk [vmem:[#allocation3 + $0xc] sm:$0x3] %vm252_vm5, %v358_v62  ;;  %2350 = vmatpush3.bf16.msra.mxu1 %v2613_v9  ;;  %2173 = vmatprep.mubr.msk.f32.mxu1 %vm2538_vm0, %v2539_v4 }
 0x578   :  { %363 = vst.msk [vmem:[#allocation3 + $0x2] sm:$0x3] %vm254_vm6, %v355_v61  ;;  %2351 = vmatprep.subr.bf16.mxu1 %v2537_v0 }
 0x57b   :  { %2353 = vmatpush3.bf16.msra.mxu1 %v2629_v15 }
 0x57c   :  { %2360 = vmatprep.subr.bf16.mxu1 %v2537_v0 }
 0x649   :  { %v432_v63 = vpop.f32.mrb[2].mxu1 }
 0x64a   :  { %v444_v1 = vadd.f32 %v432_v63, %v2653_v17  ;;  %v2153_v2 = vpop.f32.mrb[3].mxu1  ;;  %v437_v5 = vadd.f32 %v436_v3, %v432_v63 }
 0x64c   :  { %446 = vrot.lane.b32.xlu1 %v444_v1, %s2540_s2  ;;  %v1984_v6 = vmul.f32 -1.442695, %v437_v5  ;;  %v760_v5 = vld [vmem:[#allocation2 + $0xa] sm:$0x3] }
 0x64e   :  { %2453 = vpow2.f32 %v1984_v6 }
 0x658   :  { %v2454_v7 = vpop.eup %2453 }
 0x659   :  { %v441_v8 = vadd.f32 1.0, %v2454_v7 }
 0x65b   :  { %2455 = vrcp.f32 %v441_v8 }
 0x665   :  { %v2456_v10 = vpop.eup %2455 }
 0x666   :  { %v456_v18 = vsub.f32 1.0, %v2456_v10  ;;  %v462_v20 = vmul.f32 %v2456_v10, %v355_v61 }
 0x6be   :  { %v447_v11 = vpop.permute.xlu1 %446 }
 0x6bf   :  { %v449_v12 = vmul.f32 %v2456_v10, %v447_v11 }
 0x6c1   :  { %451 = vrot.lane.b32.xlu0 %v449_v12, %s2540_s2 }
 0x733   :  { %v452_v13 = vpop.permute.xlu0 %451 }
 0x734   :  { %v454_v14 = vadd.f32 %v452_v13, %v436_v3 }
 0x736   :  { %2457 = vtanh.f32 %v454_v14 }
 0x740   :  { %v2458_v16 = vpop.eup %2457 }
 0x741   :  { %458 = vrot.lane.b32.xlu1 %v2458_v16, %s2541_s3 }
 0x7b3   :  { %v459_v19 = vpop.permute.xlu1 %458 }
 0x7b4   :  { %v461_v21 = vmul.f32 %v459_v19, %v456_v18 }
 0x7b6   :  { %v463_v22 = vadd.f32 %v462_v20, %v461_v21 }
 0x7b8   :  { %469 = vst.msk [vmem:[#allocation3 + $0xa] sm:$0x3] %vm250_vm3, %v463_v22  ;;  %465 = vrot.lane.b32.xlu0 %v463_v22, %s2541_s3 }
 0x82a   :  { %v466_v23 = vpop.permute.xlu0 %465 }
 0x82b   :  { %468 = vst.msk [vmem:[#allocation3 + $0x4] sm:$0x3] %vm248_vm4, %v466_v23  ;;  %2163 = vmatmul.mubr.msk.f32.vlgmr.msra.gmra.mrb[4].mxu0 %vm45_vm1, %v466_v23 }
 0x82c   :  { %470 = vst.msk [vmem:[#allocation3 + $0xa] sm:$0x3] %vm252_vm5, %v466_v23  ;;  %2356 = vmatpush3.bf16.msra.mxu0 %v2613_v9  ;;  %2184 = vmatprep.mubr.msk.f32.mxu0 %vm2538_vm0, %v2539_v4 }
 0x82d   :  { %471 = vst.msk [vmem:[#allocation3 + $0x4] sm:$0x3] %vm254_vm6, %v463_v22  ;;  %2357 = vmatprep.subr.bf16.mxu0 %v2537_v0 }
 0x830   :  { %2359 = vmatpush3.bf16.msra.mxu0 %v2629_v15 }
 0x831   :  { %2366 = vmatprep.subr.bf16.mxu0 %v2537_v0 }
 0x8fe   :  { %v540_v24 = vpop.f32.mrb[4].mxu0 }
 0x8ff   :  { %v552_v25 = vadd.f32 %v540_v24, %v2653_v17  ;;  %v2164_v26 = vpop.f32.mrb[5].mxu0  ;;  %v545_v28 = vadd.f32 %v544_v27, %v540_v24 }
 0x900   :  { %v868_v26 = vld [vmem:[#allocation2 + $0xc] sm:$0x3] }
 0x901   :  { %554 = vrot.lane.b32.xlu1 %v552_v25, %s2540_s2  ;;  %v1986_v29 = vmul.f32 -1.442695, %v545_v28 }
 0x903   :  { %2459 = vpow2.f32 %v1986_v29 }
 0x90d   :  { %v2460_v30 = vpop.eup %2459 }
 0x90e   :  { %v549_v31 = vadd.f32 1.0, %v2460_v30 }
 0x910   :  { %2461 = vrcp.f32 %v549_v31 }
 0x91a   :  { %v2462_v32 = vpop.eup %2461 }
 0x91b   :  { %v564_v38 = vsub.f32 1.0, %v2462_v32  ;;  %v570_v40 = vmul.f32 %v2462_v32, %v463_v22 }
 0x973   :  { %v555_v33 = vpop.permute.xlu1 %554 }
 0x974   :  { %v557_v34 = vmul.f32 %v2462_v32, %v555_v33 }
 0x976   :  { %559 = vrot.lane.b32.xlu0 %v557_v34, %s2540_s2 }
 0x9e8   :  { %v560_v35 = vpop.permute.xlu0 %559 }
 0x9e9   :  { %v562_v36 = vadd.f32 %v560_v35, %v544_v27 }
 0x9eb   :  { %2463 = vtanh.f32 %v562_v36 }
 0x9f5   :  { %v2464_v37 = vpop.eup %2463 }
 0x9f6   :  { %566 = vrot.lane.b32.xlu1 %v2464_v37, %s2541_s3 }
 0xa68   :  { %v567_v39 = vpop.permute.xlu1 %566 }
 0xa69   :  { %v569_v41 = vmul.f32 %v567_v39, %v564_v38 }
 0xa6b   :  { %v571_v42 = vadd.f32 %v570_v40, %v569_v41 }
 0xa6d   :  { %577 = vst.msk [vmem:[#allocation3 + $0x8] sm:$0x3] %vm250_vm3, %v571_v42  ;;  %573 = vrot.lane.b32.xlu0 %v571_v42, %s2541_s3 }
 0xadf   :  { %v574_v43 = vpop.permute.xlu0 %573 }
 0xae0   :  { %576 = vst.msk [vmem:[#allocation3 + $0x6] sm:$0x3] %vm248_vm4, %v574_v43  ;;  %2174 = vmatmul.mubr.msk.f32.vlgmr.msra.gmra.mrb[4].mxu1 %vm45_vm1, %v574_v43 }
 0xae1   :  { %578 = vst.msk [vmem:[#allocation3 + $0x8] sm:$0x3] %vm252_vm5, %v574_v43  ;;  %2362 = vmatpush3.bf16.msra.mxu1 %v2613_v9  ;;  %2195 = vmatprep.mubr.msk.f32.mxu1 %vm2538_vm0, %v2539_v4 }
 0xae2   :  { %579 = vst.msk [vmem:[#allocation3 + $0x6] sm:$0x3] %vm254_vm6, %v571_v42  ;;  %2363 = vmatprep.subr.bf16.mxu1 %v2537_v0 }
 0xae5   :  { %2365 = vmatpush3.bf16.msra.mxu1 %v2629_v15 }
 0xbb3   :  { %v648_v44 = vpop.f32.mrb[4].mxu1 }
 0xbb4   :  { %v660_v45 = vadd.f32 %v648_v44, %v2653_v17  ;;  %v2175_v46 = vpop.f32.mrb[5].mxu1  ;;  %v653_v48 = vadd.f32 %v652_v47, %v648_v44 }
 0xbb5   :  { %v976_v46 = vld [vmem:[#allocation2 + $0xe] sm:$0x3] }
 0xbb6   :  { %662 = vrot.lane.b32.xlu1 %v660_v45, %s2540_s2  ;;  %v1988_v49 = vmul.f32 -1.442695, %v653_v48 }
 0xbb8   :  { %2465 = vpow2.f32 %v1988_v49 }
 0xbc2   :  { %v2466_v50 = vpop.eup %2465 }
 0xbc3   :  { %v657_v51 = vadd.f32 1.0, %v2466_v50 }
 0xbc5   :  { %2467 = vrcp.f32 %v657_v51 }
 0xbcf   :  { %v2468_v52 = vpop.eup %2467 }
 0xbd0   :  { %v672_v58 = vsub.f32 1.0, %v2468_v52  ;;  %v678_v60 = vmul.f32 %v2468_v52, %v571_v42 }
 0xc28   :  { %v663_v53 = vpop.permute.xlu1 %662 }
 0xc29   :  { %v665_v54 = vmul.f32 %v2468_v52, %v663_v53 }
 0xc2b   :  { %667 = vrot.lane.b32.xlu0 %v665_v54, %s2540_s2 }
 0xc9d   :  { %v668_v55 = vpop.permute.xlu0 %667 }
 0xc9e   :  { %v670_v56 = vadd.f32 %v668_v55, %v652_v47 }
 0xca0   :  { %2469 = vtanh.f32 %v670_v56  ;;  %v1114_v56 = vld [vmem:[%s2989_s6 + $0x8] sm:$0xff] }
 0xcaa   :  { %v2470_v57 = vpop.eup %2469 }
 0xcab   :  { %674 = vrot.lane.b32.xlu1 %v2470_v57, %s2541_s3  ;;  %v1115_v57 = vld [vmem:[%s2989_s6 + $0x10] sm:$0xff] }
 0xd1d   :  { %v675_v59 = vpop.permute.xlu1 %674 }
 0xd1e   :  { %v677_v61 = vmul.f32 %v675_v59, %v672_v58  ;;  %v1116_v59 = vld [vmem:[%s2989_s6 + $0x18] sm:$0xff] }
 0xd20   :  { %v679_v62 = vadd.f32 %v678_v60, %v677_v61  ;;  %v1014_v60 = vld [vmem:[%s2990_s5] sm:$0xff]  ;;  %v1015_v61 = vld [vmem:[%s2990_s5 + $0x8] sm:$0xff] }
 0xd22   :  { %685 = vst.msk [vmem:[#allocation3 + $0x6] sm:$0x3] %vm250_vm3, %v679_v62  ;;  %681 = vrot.lane.b32.xlu0 %v679_v62, %s2541_s3 }
 0xd94   :  { %v682_v63 = vpop.permute.xlu0 %681 }
 0xd95   :  { %684 = vst.msk [vmem:[#allocation3 + $0x8] sm:$0x3] %vm248_vm4, %v682_v63  ;;  %2185 = vmatmul.mubr.msk.f32.vlgmr.msra.gmra.mrb[6].mxu0 %vm45_vm1, %v682_v63 }
 0xd96   :  { %686 = vst.msk [vmem:[#allocation3 + $0x6] sm:$0x3] %vm252_vm5, %v682_v63  ;;  %2368 = vmatpush3.bf16.msra.mxu0 %v2613_v9  ;;  %2206 = vmatprep.mubr.msk.f32.mxu0 %vm2538_vm0, %v2539_v4  ;;  %v1016_v63 = vld [vmem:[%s2990_s5 + $0x10] sm:$0xff] }
 0xd97   :  { %687 = vst.msk [vmem:[#allocation3 + $0x8] sm:$0x3] %vm254_vm6, %v679_v62  ;;  %2369 = vmatprep.subr.bf16.mxu0 %v2537_v0 }
 0xd9a   :  { %2371 = vmatpush3.bf16.msra.mxu0 %v2629_v15 }
 0xd9b   :  { %2388 = vmatprep.subr.bf16.mxu0 %v2537_v0 }
 0xe68   :  { %v756_v1 = vpop.f32.mrb[6].mxu0 }
 0xe69   :  { %v768_v2 = vadd.f32 %v756_v1, %v2653_v17  ;;  %v2186_v3 = vpop.f32.mrb[7].mxu0  ;;  %v761_v6 = vadd.f32 %v760_v5, %v756_v1  ;;  %v1017_v1 = vld [vmem:[%s2990_s5 + $0x18] sm:$0xff] }
 0xe6a   :  { %v2376_v3 = vpack.c.bf16 %v1017_v1, %v1016_v63 }
 0xe6b   :  { %770 = vrot.lane.b32.xlu1 %v768_v2, %s2540_s2  ;;  %v1990_v7 = vmul.f32 -1.442695, %v761_v6  ;;  %v2796_v2 = vpack.c.bf16 %v1116_v59, %v1115_v57  ;;  %v1018_v6 = vld [vmem:[%s2990_s5 + $0x20] sm:$0xff] }
 0xe6d   :  { %2471 = vpow2.f32 %v1990_v7  ;;  %v1019_v7 = vld [vmem:[%s2990_s5 + $0x28] sm:$0xff] }
 0xe77   :  { %v2472_v9 = vpop.eup %2471 }
 0xe78   :  { %v765_v8 = vadd.f32 1.0, %v2472_v9  ;;  %v2380_v9 = vpack.c.bf16 %v1019_v7, %v1018_v6 }
 0xe7a   :  { %2473 = vrcp.f32 %v765_v8  ;;  %v1020_v8 = vld [vmem:[%s2990_s5 + $0x30] sm:$0xff] }
 0xe84   :  { %v2474_v10 = vpop.eup %2473 }
 0xe85   :  { %v780_v16 = vsub.f32 1.0, %v2474_v10  ;;  %v786_v19 = vmul.f32 %v2474_v10, %v679_v62  ;;  %v2372_v62 = vpack.c.bf16 %v1015_v61, %v1014_v60 }
 0xe87   :  { %2373 = vmatprep.subr.bf16.mxu1 %v2372_v62 }
 0xedd   :  { %v771_v11 = vpop.permute.xlu1 %770 }
 0xede   :  { %v773_v12 = vmul.f32 %v2474_v10, %v771_v11  ;;  %v1021_v10 = vld [vmem:[%s2990_s5 + $0x38] sm:$0xff] }
 0xedf   :  { %v2384_v11 = vpack.c.bf16 %v1021_v10, %v1020_v8 }
 0xee0   :  { %775 = vrot.lane.b32.xlu0 %v773_v12, %s2540_s2 }
 0xf52   :  { %v776_v15 = vpop.permute.xlu0 %775 }
 0xf53   :  { %v778_v13 = vadd.f32 %v776_v15, %v760_v5 }
 0xf55   :  { %2475 = vtanh.f32 %v778_v13 }
 0xf5f   :  { %v2476_v14 = vpop.eup %2475 }
 0xf60   :  { %782 = vrot.lane.b32.xlu1 %v2476_v14, %s2541_s3 }
 0xfd2   :  { %v783_v18 = vpop.permute.xlu1 %782 }
 0xfd3   :  { %v785_v20 = vmul.f32 %v783_v18, %v780_v16  ;;  %v1998_v16 = vld [vmem:[%s2991_s8] ss:$0 sm:$0xff] }
 0xfd5   :  { %v787_v21 = vadd.f32 %v786_v19, %v785_v20 }
 0xfd7   :  { %793 = vst.msk [vmem:[#allocation3 + $0x4] sm:$0x3] %vm250_vm3, %v787_v21  ;;  %789 = vrot.lane.b32.xlu0 %v787_v21, %s2541_s3 }
0x1049   :  { %v790_v22 = vpop.permute.xlu0 %789 }
0x104a   :  { %792 = vst.msk [vmem:[#allocation3 + $0xa] sm:$0x3] %vm248_vm4, %v790_v22  ;;  %2196 = vmatmul.mubr.msk.f32.vlgmr.msra.gmra.mrb[6].mxu1 %vm45_vm1, %v790_v22 }
0x104b   :  { %794 = vst.msk [vmem:[#allocation3 + $0x4] sm:$0x3] %vm252_vm5, %v790_v22  ;;  %2375 = vmatpush3.bf16.msra.mxu1 %v2372_v62 }
0x104c   :  { %795 = vst.msk [vmem:[#allocation3 + $0xa] sm:$0x3] %vm254_vm6, %v787_v21  ;;  %2377 = vmatprep.subr.bf16.mxu1 %v2376_v3 }
0x104f   :  { %2379 = vmatpush3.bf16.msra.mxu1 %v2376_v3 }
0x1050   :  { %2381 = vmatprep.subr.bf16.mxu1 %v2380_v9 }
0x1053   :  { %2383 = vmatpush3.bf16.msra.mxu1 %v2380_v9 }
0x1054   :  { %2385 = vmatprep.subr.bf16.mxu1 %v2384_v11 }
0x1057   :  { %2387 = vmatpush3.bf16.msra.mxu1 %v2384_v11 }
0x1058   :  { %2400 = vmatprep.subr.bf16.mxu1 %v2537_v0 }
0x111d   :  { %v864_v23 = vpop.f32.mrb[6].mxu1 }
0x111e   :  { %v876_v24 = vadd.f32 %v864_v23, %v2653_v17  ;;  %v2197_v25 = vpop.f32.mrb[7].mxu1  ;;  %v869_v27 = vadd.f32 %v868_v26, %v864_v23 }
0x1120   :  { %878 = vrot.lane.b32.xlu1 %v876_v24, %s2540_s2  ;;  %v1992_v28 = vmul.f32 -1.442695, %v869_v27 }
0x1122   :  { %2477 = vpow2.f32 %v1992_v28 }
0x112c   :  { %v2478_v29 = vpop.eup %2477 }
0x112d   :  { %v873_v30 = vadd.f32 1.0, %v2478_v29 }
0x112f   :  { %2479 = vrcp.f32 %v873_v30 }
0x1139   :  { %v2480_v31 = vpop.eup %2479 }
0x113a   :  { %v888_v37 = vsub.f32 1.0, %v2480_v31  ;;  %v894_v39 = vmul.f32 %v2480_v31, %v787_v21 }
0x1192   :  { %v879_v32 = vpop.permute.xlu1 %878 }
0x1193   :  { %v881_v33 = vmul.f32 %v2480_v31, %v879_v32 }
0x1195   :  { %883 = vrot.lane.b32.xlu0 %v881_v33, %s2540_s2 }
0x1207   :  { %v884_v34 = vpop.permute.xlu0 %883 }
0x1208   :  { %v886_v35 = vadd.f32 %v884_v34, %v868_v26  ;;  %v1995_v26 = vld [vmem:[%s2992_s7] ss:$0 sm:$0xff] }
0x120a   :  { %2481 = vtanh.f32 %v886_v35 }
0x1214   :  { %v2482_v36 = vpop.eup %2481 }
0x1215   :  { %890 = vrot.lane.b32.xlu1 %v2482_v36, %s2541_s3 }
0x1287   :  { %v891_v38 = vpop.permute.xlu1 %890 }
0x1288   :  { %v893_v40 = vmul.f32 %v891_v38, %v888_v37 }
0x128a   :  { %v2753_v41 = vadd.f32 %v894_v39, %v893_v40 }
0x128c   :  { %901 = vst.msk [vmem:[#allocation3 + $0x2] sm:$0x3] %vm250_vm3, %v2753_v41  ;;  %897 = vrot.lane.b32.xlu0 %v2753_v41, %s2541_s3 }
0x12fe   :  { %v898_v42 = vpop.permute.xlu0 %897 }
0x12ff   :  { %900 = vst.msk [vmem:[#allocation3 + $0xc] sm:$0x3] %vm248_vm4, %v898_v42  ;;  %2207 = vmatmul.mubr.msk.f32.vlgmr.msra.gmra.mrb[8].mxu0 %vm45_vm1, %v898_v42 }
0x1300   :  { %902 = vst.msk [vmem:[#allocation3 + $0x2] sm:$0x3] %vm252_vm5, %v898_v42  ;;  %2236 = vmatprep.mubr.msk.f32.mxu0 %vm2538_vm0, %v2539_v4 }
0x1301   :  { %903 = vst.msk [vmem:[#allocation3 + $0xc] sm:$0x3] %vm254_vm6, %v2753_v41 }
0x13d2   :  { %v972_v43 = vpop.f32.mrb[8].mxu0 }
0x13d3   :  { %v984_v44 = vadd.f32 %v972_v43, %v2653_v17  ;;  %v2208_v45 = vpop.f32.mrb[9].mxu0  ;;  %v977_v47 = vadd.f32 %v976_v46, %v972_v43  ;;  %v1113_v17 = vld [vmem:[%s2989_s6] sm:$0xff] }
0x13d4   :  { %v2778_v58 = vpack.c.bf16 %v1114_v56, %v1113_v17 }
0x13d5   :  { %986 = vrot.lane.b32.xlu1 %v984_v44, %s2540_s2  ;;  %v1994_v48 = vmul.f32 -1.442695, %v977_v47 }
0x13d6   :  { %2390 = vmatpush3.bf16.msra.mxu0 %v2778_v58 }
0x13d7   :  { %2483 = vpow2.f32 %v1994_v48  ;;  %2391 = vmatprep.subr.bf16.mxu0 %v2537_v0 }
0x13da   :  { %2393 = vmatpush3.bf16.msra.mxu0 %v2796_v2 }
0x13db   :  { %2394 = vmatprep.subr.bf16.mxu0 %v2537_v0 }
0x13dd   :  { %2237 = vmatmul.mubr.f32.vlgmr.msra.gmra.mrb[10].mxu0 %v2539_v4 }
0x13de   :  { %2396 = vmatpush3.bf16.msra.mxu0 %v2778_v58  ;;  %2247 = vmatprep.mubr.msk.f32.mxu0 %vm2538_vm0, %v2539_v4 }
0x13df   :  { %2397 = vmatprep.subr.bf16.mxu0 %v2537_v0 }
0x13e1   :  { %v2484_v49 = vpop.eup %2483 }
0x13e2   :  { %v981_v50 = vadd.f32 1.0, %v2484_v49  ;;  %2399 = vmatpush3.bf16.msra.mxu0 %v2796_v2 }
0x13e3   :  { %2406 = vmatprep.subr.bf16.mxu0 %v2537_v0 }
0x13e4   :  { %2485 = vrcp.f32 %v981_v50 }
0x13ee   :  { %v2486_v51 = vpop.eup %2485 }
0x13ef   :  { %v996_v12 = vsub.f32 1.0, %v2486_v51  ;;  %v1002_v13 = vmul.f32 %v2486_v51, %v2753_v41 }
0x1447   :  { %v987_v52 = vpop.permute.xlu1 %986 }
0x1448   :  { %v989_v53 = vmul.f32 %v2486_v51, %v987_v52 }
0x144a   :  { %991 = vrot.lane.b32.xlu0 %v989_v53, %s2540_s2 }
0x14b0   :  { %v1189_v19 = vpop.f32.mrb[10].mxu0 }
0x14b1   :  { %v2238_v20 = vpop.f32.mrb[11].mxu0 }
0x14bc   :  { %v992_v54 = vpop.permute.xlu0 %991 }
0x14bd   :  { %v994_v55 = vadd.f32 %v992_v54, %v976_v46 }
0x14bf   :  { %2487 = vtanh.f32 %v994_v55 }
0x14c9   :  { %v2488_v5 = vpop.eup %2487 }
0x14ca   :  { %998 = vrot.lane.b32.xlu1 %v2488_v5, %s2541_s3 }
0x14ce   :  { %1201 = vrot.lane.b32.xlu1 %v1998_v16, %s2540_s2 }
0x153c   :  { %v999_v15 = vpop.permute.xlu1 %998 }
0x153d   :  { %v1001_v14 = vmul.f32 %v999_v15, %v996_v12 }
0x153f   :  { %v1003_v18 = vadd.f32 %v1002_v13, %v1001_v14 }
0x1540   :  { %v2829_v21 = vpop.permute.xlu1 %1201 }
0x1541   :  { %1009 = vst.msk [vmem:[#allocation3] sm:$0x3] %vm250_vm3, %v1003_v18  ;;  %1005 = vrot.lane.b32.xlu0 %v1003_v18, %s2541_s3  ;;  %v1204_v22 = vadd.f32 %v2829_v21, %v1189_v19 }
0x1545   :  { %1206 = vrot.lane.b32.xlu0 %v1204_v22, %s2540_s2 }
0x15b3   :  { %v1006_v23 = vpop.permute.xlu0 %1005 }
0x15b4   :  { %1008 = vst.msk [vmem:[#allocation3 + $0xe] sm:$0x3] %vm248_vm4, %v1006_v23 }
0x15b5   :  { %1010 = vst.msk [vmem:[#allocation3] sm:$0x3] %vm252_vm5, %v1006_v23 }
0x15b6   :  { %1011 = vst.msk [vmem:[#allocation3 + $0xe] sm:$0x3] %vm254_vm6, %v1003_v18 }
0x15b7   :  { %v1207_v36 = vpop.permute.xlu0 %1206 }
0x15bc   :  { %v1012_v24 = vld [vmem:[#allocation3] sm:$0xff] }
0x15bd   :  { %2225 = vmatprep.mubr.msk.f32.mxu1 %vm1029_vm7, %v1012_v24  ;;  %v1013_v25 = vld [vmem:[#allocation3 + $0x8] sm:$0xff] }
0x15be   :  { %2226 = vmatmul.mubr.msk.f32.vlgmr.msra.gmra.mrb[8].mxu1 %vm1029_vm7, %v1013_v25 }
0x15bf   :  { %2402 = vmatpush3.bf16.msra.mxu1 %v2778_v58  ;;  %2258 = vmatprep.mubr.msk.f32.mxu1 %vm2538_vm0, %v2539_v4 }
0x15c0   :  { %2403 = vmatprep.subr.bf16.mxu1 %v2537_v0 }
0x15c3   :  { %2405 = vmatpush3.bf16.msra.mxu1 %v2796_v2 }
0x15c4   :  { %2412 = vmatprep.subr.bf16.mxu1 %v2537_v0 }
0x1691   :  { %v2227_v27 = vpop.f32.mrb[8].mxu1 }
0x1692   :  { %v1108_v28 = vadd.f32 %v2227_v27, %v1995_v26  ;;  %v1102_v29 = vpop.f32.mrb[9].mxu1 }
0x1693   :  { %v1103_v30 = vadd.f32 %v1995_v26, %v1102_v29 }
0x1694   :  { %1112 = vst.msk [vmem:[#allocation2 + $0x8] sm:$0xff] %vm127_vm2, %v1108_v28 }
0x1695   :  { %1111 = vst.msk [vmem:[#allocation2] sm:$0xff] %vm127_vm2, %v1103_v30 }
0x169c   :  { %v1193_v31 = vld [vmem:[#allocation2] sm:$0x3]  ;;  %v1302_v51 = vld [vmem:[#allocation2 + $0x2] sm:$0x3]  ;;  %v1408_v10 = vld [vmem:[#allocation2 + $0x4] sm:$0x3] }
0x169d   :  { %v1194_v32 = vadd.f32 %v1193_v31, %v1189_v19 }
0x169f   :  { %v1999_v33 = vmul.f32 -1.442695, %v1194_v32  ;;  %v1514_v32 = vld [vmem:[#allocation2 + $0x6] sm:$0x3] }
0x16a1   :  { %2489 = vpow2.f32 %v1999_v33 }
0x16ab   :  { %v2490_v34 = vpop.eup %2489 }
0x16ac   :  { %v1198_v35 = vadd.f32 1.0, %v2490_v34 }
0x16ae   :  { %2491 = vrcp.f32 %v1198_v35 }
0x16b8   :  { %v2492_v37 = vpop.eup %2491 }
0x16b9   :  { %v1209_v38 = vmul.f32 %v2492_v37, %v1207_v36  ;;  %v1216_v42 = vsub.f32 1.0, %v2492_v37  ;;  %v1222_v44 = vmul.f32 0.0, %v2492_v37 }
0x16bb   :  { %1211 = vrot.lane.b32.xlu1 %v1209_v38, %s2540_s2 }
0x172d   :  { %v1212_v39 = vpop.permute.xlu1 %1211 }
0x172e   :  { %v1214_v40 = vadd.f32 %v1212_v39, %v1193_v31 }
0x1730   :  { %2493 = vtanh.f32 %v1214_v40 }
0x173a   :  { %v2494_v41 = vpop.eup %2493 }
0x173b   :  { %1218 = vrot.lane.b32.xlu0 %v2494_v41, %s2541_s3 }
0x17ad   :  { %v1219_v43 = vpop.permute.xlu0 %1218 }
0x17ae   :  { %v1221_v45 = vmul.f32 %v1219_v43, %v1216_v42 }
0x17b0   :  { %v1223_v46 = vadd.f32 %v1222_v44, %v1221_v45 }
0x17b2   :  { %1225 = vrot.lane.b32.xlu1 %v1223_v46, %s2541_s3 }
0x1824   :  { %v1226_v47 = vpop.permute.xlu1 %1225 }
0x1825   :  { %1228 = vst.msk [vmem:[%s2993_s9] sm:$0x3] %vm248_vm4, %v1226_v47  ;;  %2248 = vmatmul.mubr.msk.f32.vlgmr.msra.gmra.mrb[12].mxu0 %vm45_vm1, %v1226_v47 }
0x1826   :  { %1229 = vst.msk [vmem:[%s2993_s9 + $0xe] sm:$0x3] %vm252_vm5, %v1226_v47  ;;  %2408 = vmatpush3.bf16.msra.mxu0 %v2778_v58  ;;  %2269 = vmatprep.mubr.msk.f32.mxu0 %vm2538_vm0, %v2539_v4 }
0x1827   :  { %2409 = vmatprep.subr.bf16.mxu0 %v2537_v0 }
0x182a   :  { %2411 = vmatpush3.bf16.msra.mxu0 %v2796_v2 }
0x182b   :  { %2418 = vmatprep.subr.bf16.mxu0 %v2537_v0 }
0x18f8   :  { %v1298_v48 = vpop.f32.mrb[12].mxu0 }
0x18f9   :  { %v1310_v49 = vadd.f32 %v1298_v48, %v2829_v21  ;;  %v2249_v50 = vpop.f32.mrb[13].mxu0  ;;  %v1303_v52 = vadd.f32 %v1302_v51, %v1298_v48 }
0x18fb   :  { %1312 = vrot.lane.b32.xlu0 %v1310_v49, %s2540_s2  ;;  %v2001_v53 = vmul.f32 -1.442695, %v1303_v52  ;;  %v1620_v52 = vld [vmem:[#allocation2 + $0x8] sm:$0x3] }
0x18fd   :  { %2495 = vpow2.f32 %v2001_v53 }
0x1907   :  { %v2496_v54 = vpop.eup %2495 }
0x1908   :  { %v1307_v55 = vadd.f32 1.0, %v2496_v54 }
0x190a   :  { %2497 = vrcp.f32 %v1307_v55 }
0x1914   :  { %v2498_v17 = vpop.eup %2497 }
0x1915   :  { %v1322_v62 = vsub.f32 1.0, %v2498_v17  ;;  %v1328_v1 = vmul.f32 %v2498_v17, %v1223_v46 }
0x196d   :  { %v1313_v56 = vpop.permute.xlu0 %1312 }
0x196e   :  { %v1315_v57 = vmul.f32 %v2498_v17, %v1313_v56 }
0x1970   :  { %1317 = vrot.lane.b32.xlu1 %v1315_v57, %s2540_s2 }
0x19e2   :  { %v1318_v59 = vpop.permute.xlu1 %1317 }
0x19e3   :  { %v1320_v60 = vadd.f32 %v1318_v59, %v1302_v51 }
0x19e5   :  { %2499 = vtanh.f32 %v1320_v60 }
0x19ef   :  { %v2500_v61 = vpop.eup %2499 }
0x19f0   :  { %1324 = vrot.lane.b32.xlu0 %v2500_v61, %s2541_s3 }
0x1a62   :  { %v1325_v63 = vpop.permute.xlu0 %1324 }
0x1a63   :  { %v1327_v3 = vmul.f32 %v1325_v63, %v1322_v62 }
0x1a65   :  { %v1329_v5 = vadd.f32 %v1328_v1, %v1327_v3 }
0x1a67   :  { %1331 = vrot.lane.b32.xlu1 %v1329_v5, %s2541_s3 }
0x1ad9   :  { %v1332_v6 = vpop.permute.xlu1 %1331 }
0x1ada   :  { %1334 = vst.msk [vmem:[%s2993_s9 + $0x2] sm:$0x3] %vm248_vm4, %v1332_v6  ;;  %2259 = vmatmul.mubr.msk.f32.vlgmr.msra.gmra.mrb[10].mxu1 %vm45_vm1, %v1332_v6 }
0x1adb   :  { %1335 = vst.msk [vmem:[%s2993_s9 + $0xc] sm:$0x3] %vm252_vm5, %v1332_v6  ;;  %2414 = vmatpush3.bf16.msra.mxu1 %v2778_v58  ;;  %2280 = vmatprep.mubr.msk.f32.mxu1 %vm2538_vm0, %v2539_v4 }
0x1adc   :  { %2415 = vmatprep.subr.bf16.mxu1 %v2537_v0 }
0x1adf   :  { %2417 = vmatpush3.bf16.msra.mxu1 %v2796_v2 }
0x1ae0   :  { %2424 = vmatprep.subr.bf16.mxu1 %v2537_v0 }
0x1bad   :  { %v1404_v7 = vpop.f32.mrb[10].mxu1 }
0x1bae   :  { %v1416_v9 = vadd.f32 %v1404_v7, %v2829_v21  ;;  %v2260_v8 = vpop.f32.mrb[11].mxu1  ;;  %v1409_v11 = vadd.f32 %v1408_v10, %v1404_v7 }
0x1bb0   :  { %1418 = vrot.lane.b32.xlu0 %v1416_v9, %s2540_s2  ;;  %v2003_v12 = vmul.f32 -1.442695, %v1409_v11  ;;  %v1726_v11 = vld [vmem:[#allocation2 + $0xa] sm:$0x3] }
0x1bb2   :  { %2501 = vpow2.f32 %v2003_v12 }
0x1bbc   :  { %v2502_v15 = vpop.eup %2501 }
0x1bbd   :  { %v1413_v13 = vadd.f32 1.0, %v2502_v15 }
0x1bbf   :  { %2503 = vrcp.f32 %v1413_v13 }
0x1bc9   :  { %v2504_v14 = vpop.eup %2503 }
0x1bca   :  { %v1428_v23 = vsub.f32 1.0, %v2504_v14  ;;  %v1434_v25 = vmul.f32 %v2504_v14, %v1329_v5 }
0x1c22   :  { %v1419_v16 = vpop.permute.xlu0 %1418 }
0x1c23   :  { %v1421_v18 = vmul.f32 %v2504_v14, %v1419_v16 }
0x1c25   :  { %1423 = vrot.lane.b32.xlu1 %v1421_v18, %s2540_s2 }
0x1c97   :  { %v1424_v19 = vpop.permute.xlu1 %1423 }
0x1c98   :  { %v1426_v20 = vadd.f32 %v1424_v19, %v1408_v10 }
0x1c9a   :  { %2505 = vtanh.f32 %v1426_v20 }
0x1ca4   :  { %v2506_v22 = vpop.eup %2505 }
0x1ca5   :  { %1430 = vrot.lane.b32.xlu0 %v2506_v22, %s2541_s3 }
0x1d17   :  { %v1431_v24 = vpop.permute.xlu0 %1430 }
0x1d18   :  { %v1433_v26 = vmul.f32 %v1431_v24, %v1428_v23 }
0x1d1a   :  { %v1435_v27 = vadd.f32 %v1434_v25, %v1433_v26 }
0x1d1c   :  { %1437 = vrot.lane.b32.xlu1 %v1435_v27, %s2541_s3 }
0x1d8e   :  { %v1438_v28 = vpop.permute.xlu1 %1437 }
0x1d8f   :  { %1440 = vst.msk [vmem:[%s2993_s9 + $0x4] sm:$0x3] %vm248_vm4, %v1438_v28  ;;  %2270 = vmatmul.mubr.msk.f32.vlgmr.msra.gmra.mrb[14].mxu0 %vm45_vm1, %v1438_v28 }
0x1d90   :  { %1441 = vst.msk [vmem:[%s2993_s9 + $0xa] sm:$0x3] %vm252_vm5, %v1438_v28  ;;  %2420 = vmatpush3.bf16.msra.mxu0 %v2778_v58  ;;  %2291 = vmatprep.mubr.msk.f32.mxu0 %vm2538_vm0, %v2539_v4 }
0x1d91   :  { %2421 = vmatprep.subr.bf16.mxu0 %v2537_v0 }
0x1d94   :  { %2423 = vmatpush3.bf16.msra.mxu0 %v2796_v2 }
0x1d95   :  { %2430 = vmatprep.subr.bf16.mxu0 %v2537_v0 }
0x1e62   :  { %v1510_v29 = vpop.f32.mrb[14].mxu0 }
0x1e63   :  { %v1522_v30 = vadd.f32 %v1510_v29, %v2829_v21  ;;  %v2271_v31 = vpop.f32.mrb[15].mxu0  ;;  %v1515_v33 = vadd.f32 %v1514_v32, %v1510_v29  ;;  %v1832_v29 = vld [vmem:[#allocation2 + $0xc] sm:$0x3] }
0x1e65   :  { %1524 = vrot.lane.b32.xlu0 %v1522_v30, %s2540_s2  ;;  %v2005_v34 = vmul.f32 -1.442695, %v1515_v33 }
0x1e67   :  { %2507 = vpow2.f32 %v2005_v34 }
0x1e71   :  { %v2508_v35 = vpop.eup %2507 }
0x1e72   :  { %v1519_v36 = vadd.f32 1.0, %v2508_v35 }
0x1e74   :  { %2509 = vrcp.f32 %v1519_v36 }
0x1e7e   :  { %v2510_v37 = vpop.eup %2509 }
0x1e7f   :  { %v1534_v43 = vsub.f32 1.0, %v2510_v37  ;;  %v1540_v45 = vmul.f32 %v2510_v37, %v1435_v27 }
0x1ed7   :  { %v1525_v38 = vpop.permute.xlu0 %1524 }
0x1ed8   :  { %v1527_v39 = vmul.f32 %v2510_v37, %v1525_v38 }
0x1eda   :  { %1529 = vrot.lane.b32.xlu1 %v1527_v39, %s2540_s2 }
0x1f4c   :  { %v1530_v40 = vpop.permute.xlu1 %1529 }
0x1f4d   :  { %v1532_v41 = vadd.f32 %v1530_v40, %v1514_v32 }
0x1f4f   :  { %2511 = vtanh.f32 %v1532_v41 }
0x1f59   :  { %v2512_v42 = vpop.eup %2511 }
0x1f5a   :  { %1536 = vrot.lane.b32.xlu0 %v2512_v42, %s2541_s3 }
0x1fcc   :  { %v1537_v44 = vpop.permute.xlu0 %1536 }
0x1fcd   :  { %v1539_v46 = vmul.f32 %v1537_v44, %v1534_v43 }
0x1fcf   :  { %v1541_v47 = vadd.f32 %v1540_v45, %v1539_v46 }
0x1fd1   :  { %1543 = vrot.lane.b32.xlu1 %v1541_v47, %s2541_s3 }
0x2043   :  { %v1544_v48 = vpop.permute.xlu1 %1543 }
0x2044   :  { %1546 = vst.msk [vmem:[%s2993_s9 + $0x6] sm:$0x3] %vm248_vm4, %v1544_v48  ;;  %2281 = vmatmul.mubr.msk.f32.vlgmr.msra.gmra.mrb[12].mxu1 %vm45_vm1, %v1544_v48 }
0x2045   :  { %1547 = vst.msk [vmem:[%s2993_s9 + $0x8] sm:$0x3] %vm252_vm5, %v1544_v48  ;;  %2426 = vmatpush3.bf16.msra.mxu1 %v2778_v58  ;;  %2302 = vmatprep.mubr.msk.f32.mxu1 %vm2538_vm0, %v2539_v4 }
0x2046   :  { %2427 = vmatprep.subr.bf16.mxu1 %v2537_v0 }
0x2049   :  { %2429 = vmatpush3.bf16.msra.mxu1 %v2796_v2 }
0x2117   :  { %v1616_v49 = vpop.f32.mrb[12].mxu1 }
0x2118   :  { %v1628_v50 = vadd.f32 %v1616_v49, %v2829_v21  ;;  %v2282_v51 = vpop.f32.mrb[13].mxu1  ;;  %v1621_v53 = vadd.f32 %v1620_v52, %v1616_v49  ;;  %v1938_v49 = vld [vmem:[#allocation2 + $0xe] sm:$0x3] }
0x211a   :  { %1630 = vrot.lane.b32.xlu0 %v1628_v50, %s2540_s2  ;;  %v2007_v54 = vmul.f32 -1.442695, %v1621_v53 }
0x211c   :  { %2513 = vpow2.f32 %v2007_v54 }
0x2126   :  { %v2514_v55 = vpop.eup %2513 }
0x2127   :  { %v1625_v17 = vadd.f32 1.0, %v2514_v55 }
0x2129   :  { %2515 = vrcp.f32 %v1625_v17 }
0x2133   :  { %v2516_v56 = vpop.eup %2515 }
0x2134   :  { %v1640_v63 = vsub.f32 1.0, %v2516_v56  ;;  %v1646_v3 = vmul.f32 %v2516_v56, %v1541_v47 }
0x218c   :  { %v1631_v57 = vpop.permute.xlu0 %1630 }
0x218d   :  { %v1633_v59 = vmul.f32 %v2516_v56, %v1631_v57 }
0x218f   :  { %1635 = vrot.lane.b32.xlu1 %v1633_v59, %s2540_s2 }
0x2201   :  { %v1636_v60 = vpop.permute.xlu1 %1635 }
0x2202   :  { %v1638_v61 = vadd.f32 %v1636_v60, %v1620_v52 }
0x2204   :  { %2517 = vtanh.f32 %v1638_v61 }
0x220e   :  { %v2518_v62 = vpop.eup %2517 }
0x220f   :  { %1642 = vrot.lane.b32.xlu0 %v2518_v62, %s2541_s3 }
0x2281   :  { %v1643_v1 = vpop.permute.xlu0 %1642 }
0x2282   :  { %v1645_v5 = vmul.f32 %v1643_v1, %v1640_v63 }
0x2284   :  { %v1647_v6 = vadd.f32 %v1646_v3, %v1645_v5 }
0x2286   :  { %1649 = vrot.lane.b32.xlu1 %v1647_v6, %s2541_s3 }
0x22f8   :  { %v1650_v7 = vpop.permute.xlu1 %1649 }
0x22f9   :  { %1652 = vst.msk [vmem:[%s2993_s9 + $0x8] sm:$0x3] %vm248_vm4, %v1650_v7  ;;  %2292 = vmatmul.mubr.msk.f32.vlgmr.msra.gmra.mrb[16].mxu0 %vm45_vm1, %v1650_v7 }
0x22fa   :  { %1653 = vst.msk [vmem:[%s2993_s9 + $0x6] sm:$0x3] %vm252_vm5, %v1650_v7  ;;  %2432 = vmatpush3.bf16.msra.mxu0 %v2778_v58  ;;  %2313 = vmatprep.mubr.msk.f32.mxu0 %vm2538_vm0, %v2539_v4 }
0x22fb   :  { %2433 = vmatprep.subr.bf16.mxu0 %v2537_v0 }
0x22fe   :  { %2435 = vmatpush3.bf16.msra.mxu0 %v2796_v2 }
0x23cc   :  { %v1722_v9 = vpop.f32.mrb[16].mxu0 }
0x23cd   :  { %v1734_v8 = vadd.f32 %v1722_v9, %v2829_v21  ;;  %v2293_v10 = vpop.f32.mrb[17].mxu0  ;;  %v1727_v12 = vadd.f32 %v1726_v11, %v1722_v9 }
0x23cf   :  { %1736 = vrot.lane.b32.xlu0 %v1734_v8, %s2540_s2  ;;  %v2009_v15 = vmul.f32 -1.442695, %v1727_v12 }
0x23d1   :  { %2519 = vpow2.f32 %v2009_v15 }
0x23db   :  { %v2520_v13 = vpop.eup %2519 }
0x23dc   :  { %v1731_v14 = vadd.f32 1.0, %v2520_v13 }
0x23de   :  { %2521 = vrcp.f32 %v1731_v14 }
0x23e8   :  { %v2522_v58 = vpop.eup %2521 }
0x23e9   :  { %v1746_v19 = vsub.f32 1.0, %v2522_v58  ;;  %v1752_v22 = vmul.f32 %v2522_v58, %v1647_v6 }
0x2441   :  { %v1737_v16 = vpop.permute.xlu0 %1736 }
0x2442   :  { %v1739_v4 = vmul.f32 %v2522_v58, %v1737_v16 }
0x2444   :  { %1741 = vrot.lane.b32.xlu1 %v1739_v4, %s2540_s2 }
0x24b6   :  { %v1742_v0 = vpop.permute.xlu1 %1741 }
0x24b7   :  { %v1744_v2 = vadd.f32 %v1742_v0, %v1726_v11 }
0x24b9   :  { %2523 = vtanh.f32 %v1744_v2 }
0x24c3   :  { %v2524_v18 = vpop.eup %2523 }
0x24c4   :  { %1748 = vrot.lane.b32.xlu0 %v2524_v18, %s2541_s3 }
0x2536   :  { %v1749_v20 = vpop.permute.xlu0 %1748 }
0x2537   :  { %v1751_v23 = vmul.f32 %v1749_v20, %v1746_v19 }
0x2539   :  { %v1753_v24 = vadd.f32 %v1752_v22, %v1751_v23 }
0x253b   :  { %1755 = vrot.lane.b32.xlu1 %v1753_v24, %s2541_s3 }
0x25ad   :  { %v1756_v25 = vpop.permute.xlu1 %1755 }
0x25ae   :  { %1758 = vst.msk [vmem:[%s2993_s9 + $0xa] sm:$0x3] %vm248_vm4, %v1756_v25  ;;  %2303 = vmatmul.mubr.msk.f32.vlgmr.msra.gmra.mrb[14].mxu1 %vm45_vm1, %v1756_v25 }
0x25af   :  { %1759 = vst.msk [vmem:[%s2993_s9 + $0x4] sm:$0x3] %vm252_vm5, %v1756_v25 }
0x2681   :  { %v1828_v26 = vpop.f32.mrb[14].mxu1 }
0x2682   :  { %v1840_v27 = vadd.f32 %v1828_v26, %v2829_v21  ;;  %v2304_v28 = vpop.f32.mrb[15].mxu1  ;;  %v1833_v30 = vadd.f32 %v1832_v29, %v1828_v26 }
0x2684   :  { %1842 = vrot.lane.b32.xlu0 %v1840_v27, %s2540_s2  ;;  %v2011_v31 = vmul.f32 -1.442695, %v1833_v30 }
0x2686   :  { %2525 = vpow2.f32 %v2011_v31 }
0x2690   :  { %v2526_v32 = vpop.eup %2525 }
0x2691   :  { %v1837_v33 = vadd.f32 1.0, %v2526_v32 }
0x2693   :  { %2527 = vrcp.f32 %v1837_v33 }
0x269d   :  { %v2528_v34 = vpop.eup %2527 }
0x269e   :  { %v1852_v40 = vsub.f32 1.0, %v2528_v34  ;;  %v1858_v42 = vmul.f32 %v2528_v34, %v1753_v24 }
0x26f6   :  { %v1843_v35 = vpop.permute.xlu0 %1842 }
0x26f7   :  { %v1845_v36 = vmul.f32 %v2528_v34, %v1843_v35 }
0x26f9   :  { %1847 = vrot.lane.b32.xlu1 %v1845_v36, %s2540_s2 }
0x276b   :  { %v1848_v37 = vpop.permute.xlu1 %1847 }
0x276c   :  { %v1850_v38 = vadd.f32 %v1848_v37, %v1832_v29 }
0x276e   :  { %2529 = vtanh.f32 %v1850_v38 }
0x2778   :  { %v2530_v39 = vpop.eup %2529 }
0x2779   :  { %1854 = vrot.lane.b32.xlu0 %v2530_v39, %s2541_s3 }
0x27eb   :  { %v1855_v41 = vpop.permute.xlu0 %1854 }
0x27ec   :  { %v1857_v43 = vmul.f32 %v1855_v41, %v1852_v40 }
0x27ee   :  { %v1859_v44 = vadd.f32 %v1858_v42, %v1857_v43 }
0x27f0   :  { %1861 = vrot.lane.b32.xlu1 %v1859_v44, %s2541_s3 }
0x2862   :  { %v1862_v45 = vpop.permute.xlu1 %1861 }
0x2863   :  { %1864 = vst.msk [vmem:[%s2993_s9 + $0xc] sm:$0x3] %vm248_vm4, %v1862_v45  ;;  %2314 = vmatmul.mubr.msk.f32.vlgmr.msra.gmra.mrb[18].mxu0 %vm45_vm1, %v1862_v45 }
0x2864   :  { %1865 = vst.msk [vmem:[%s2993_s9 + $0x2] sm:$0x3] %vm252_vm5, %v1862_v45 }
0x2936   :  { %v1934_v46 = vpop.f32.mrb[18].mxu0 }
0x2937   :  { %v1946_v47 = vadd.f32 %v1934_v46, %v2829_v21  ;;  %v2315_v48 = vpop.f32.mrb[19].mxu0  ;;  %v1939_v50 = vadd.f32 %v1938_v49, %v1934_v46 }
0x2939   :  { %1948 = vrot.lane.b32.xlu0 %v1946_v47, %s2540_s2  ;;  %v2013_v51 = vmul.f32 -1.442695, %v1939_v50 }
0x293b   :  { %2531 = vpow2.f32 %v2013_v51 }
0x2945   :  { %v2532_v52 = vpop.eup %2531 }
0x2946   :  { %v1943_v53 = vadd.f32 1.0, %v2532_v52 }
0x2948   :  { %2533 = vrcp.f32 %v1943_v53 }
0x2952   :  { %v2534_v54 = vpop.eup %2533 }
0x2953   :  { %v1958_v21 = vsub.f32 1.0, %v2534_v54  ;;  %v1964_v61 = vmul.f32 %v2534_v54, %v1859_v44 }
0x29ab   :  { %v1949_v55 = vpop.permute.xlu0 %1948 }
0x29ac   :  { %v1951_v17 = vmul.f32 %v2534_v54, %v1949_v55 }
0x29ae   :  { %1953 = vrot.lane.b32.xlu1 %v1951_v17, %s2540_s2 }
0x2a20   :  { %v1954_v56 = vpop.permute.xlu1 %1953 }
0x2a21   :  { %v1956_v57 = vadd.f32 %v1954_v56, %v1938_v49 }
0x2a23   :  { %2535 = vtanh.f32 %v1956_v57 }
0x2a2d   :  { %v2536_v59 = vpop.eup %2535 }
0x2a2e   :  { %1960 = vrot.lane.b32.xlu0 %v2536_v59, %s2541_s3 }
0x2aa0   :  { %v1961_v60 = vpop.permute.xlu0 %1960 }
0x2aa1   :  { %v1963_v62 = vmul.f32 %v1961_v60, %v1958_v21 }
0x2aa3   :  { %v1965_v63 = vadd.f32 %v1964_v61, %v1963_v62 }
0x2aa5   :  { %1967 = vrot.lane.b32.xlu1 %v1965_v63, %s2541_s3 }
0x2b17   :  { %v1968_v1 = vpop.permute.xlu1 %1967 }
0x2b18   :  { %1970 = vst.msk [vmem:[%s2993_s9 + $0xe] sm:$0x3] %vm248_vm4, %v1968_v1 }
0x2b19   :  { %1971 = vst.msk [vmem:[%s2993_s9] sm:$0x3] %vm252_vm5, %v1968_v1 }

</bundles_post_ra>
